<compile_context>
chip_gen: v6e
topology: v6e:2x2x1
jax: 0.10.0
libtpu: 0.0.40
codegen_flags: <defaults>
</compile_context>

<pallas_src>
import functools
import math

import jax
import jax.numpy as jnp
from jax.experimental import pallas as pl
from jax.experimental.pallas import tpu as pltpu


def _round_up(v, m):
    return ((v + m - 1) // m) * m


# ---------------------------------------------------------------------------
# Kernels.
#   x_ref: (tm, tk)  compute dtype (bf16)
#   w_ref: (tk, tn)  compute dtype (bf16)
#   b_ref: (1,  tn)  float32 (zeros when the layer has no bias)
#   o_ref: (tm, tn)  output dtype
# Grid axis 2 (k) is the reduction axis; the output block index ignores k, so
# the output tile stays resident in VMEM across the whole k loop.
# ---------------------------------------------------------------------------
def _linear_kernel_f32out(x_ref, w_ref, b_ref, o_ref):
    # f32 output: accumulate straight into the resident output tile (no
    # scratch); bias folded into the k == 0 initialization.
    k = pl.program_id(2)

    @pl.when(k == 0)
    def _init():
        o_ref[...] = jnp.broadcast_to(b_ref[...], o_ref.shape)

    o_ref[...] += jnp.dot(
        x_ref[...], w_ref[...], preferred_element_type=jnp.float32
    )


def _linear_kernel_scratch(x_ref, w_ref, b_ref, o_ref, acc_ref):
    # Non-f32 output (e.g. bf16): f32 VMEM accumulator, cast on the last k.
    k = pl.program_id(2)

    @pl.when(k == 0)
    def _init():
        acc_ref[...] = jnp.broadcast_to(b_ref[...], acc_ref.shape)

    acc_ref[...] += jnp.dot(
        x_ref[...], w_ref[...], preferred_element_type=jnp.float32
    )

    @pl.when(k == pl.num_programs(2) - 1)
    def _finalize():
        o_ref[...] = acc_ref[...].astype(o_ref.dtype)


# ---------------------------------------------------------------------------
# Jitted forward: pad/cast x, run the tiled pipelined matmul, slice padding.
# Weight/bias arrive already padded + cast (done once at module init).
# ---------------------------------------------------------------------------
@functools.partial(jax.jit, static_argnames=("tm", "tn", "tk", "n_out"))
def _linear_forward(x2d, w_pad, b_pad, *, tm, tn, tk, n_out):
    M, K = x2d.shape
    Kp, Np = w_pad.shape
    out_dtype = x2d.dtype
    compute_dtype = w_pad.dtype
    sub = 16 if compute_dtype.itemsize == 2 else (
        32 if compute_dtype.itemsize == 1 else 8)

    # Clamp tile sizes to the (padded) problem dims.  Kp/Np were built at init
    # as multiples of the configured tk/tn (or equal to the full padded dim),
    # so the clamped tiles always divide them exactly.
    tm = min(tm, _round_up(M, sub))
    tk = min(tk, Kp)
    tn = min(tn, Np)
    Mp = _round_up(M, tm)

    gm = Mp // tm
    gn = Np // tn
    # v7x megacore occupancy: if both parallel axes collapse to one block,
    # split the N axis so both TensorCores get work (harmless on 1-TC chips).
    while (gm == 1 and gn < 2 and tn >= 256
           and (tn // 2) % 128 == 0 and Np % (tn // 2) == 0):
        tn //= 2
        gn = Np // tn

    gk = Kp // tk
    grid = (gm, gn, gk)

    # Pad x along M/K (zero K-padding is exact: padded weight rows are zero),
    # cast to the MXU compute dtype.  Fused by XLA under this jit.
    x_p = x2d
    if (Mp, Kp) != (M, K):
        x_p = jnp.pad(x2d, ((0, Mp - M), (0, Kp - K)))
    x_p = x_p.astype(compute_dtype)

    direct = jnp.dtype(out_dtype) == jnp.float32
    x_it = compute_dtype.itemsize
    o_it = jnp.dtype(out_dtype).itemsize

    # Double-buffered VMEM footprint; keep the scoped limit v7x-safe (<=48MiB).
    # NOTE: a per-generation tile table via pltpu.get_tpu_info() could push
    # tiles further on v5e/v6e (128 MiB VMEM); defaults already fit all gens.
    vmem_bytes = (2 * (tm * tk + tk * tn) * x_it
                  + 2 * tm * tn * o_it
                  + 2 * tn * 4)
    if not direct:
        vmem_bytes += tm * tn * 4
    vmem_limit = int(min(max(32 * 1024 * 1024, vmem_bytes * 5 // 4),
                         48 * 1024 * 1024))

    # Real traffic: operands are re-read once per block of the other parallel
    # axis; output is written once.
    cost = pl.CostEstimate(
        flops=2 * Mp * Np * Kp,
        transcendentals=0,
        bytes_accessed=(Mp * Kp * gn * x_it
                        + Kp * Np * gm * x_it
                        + Mp * Np * o_it
                        + Np * 4 * gm),
    )

    in_specs = [
        pl.BlockSpec((tm, tk), lambda i, j, k: (i, k)),
        pl.BlockSpec((tk, tn), lambda i, j, k: (k, j)),
        # Bias block index is constant across k -> fetched once per out tile.
        pl.BlockSpec((1, tn), lambda i, j, k: (0, j)),
    ]
    out_spec = pl.BlockSpec((tm, tn), lambda i, j, k: (i, j))

    if direct:
        kernel = _linear_kernel_f32out
        scratch_shapes = []
    else:
        kernel = _linear_kernel_scratch
        scratch_shapes = [pltpu.VMEM((tm, tn), jnp.float32)]

    y_p = pl.pallas_call(
        kernel,
        out_shape=jax.ShapeDtypeStruct((Mp, Np), out_dtype),
        grid_spec=pltpu.PrefetchScalarGridSpec(
            num_scalar_prefetch=0,
            grid=grid,
            in_specs=in_specs,
            out_specs=out_spec,
            scratch_shapes=scratch_shapes,
        ),
        compiler_params=pltpu.CompilerParams(
            dimension_semantics=("parallel", "parallel", "arbitrary"),
            vmem_limit_bytes=vmem_limit,
        ),
        cost_estimate=cost,
    )(x_p, w_pad, b_pad)

    return y_p[:M, :n_out]


# ---------------------------------------------------------------------------
# Module wrapper
# ---------------------------------------------------------------------------
class LinearPallas:
    """JAX/Pallas equivalent of the PyTorch `Linear` module."""

    def __init__(self, n_neurons, input_shape=None, input_size=None,
                 bias=True, combine_dims=False, key=None, dtype=jnp.float32,
                 compute_dtype=jnp.bfloat16, tm=None, tn=None, tk=None,
                 min_pallas_rows=64):
        self.combine_dims = combine_dims
        if input_shape is None and input_size is None:
            raise ValueError("Expected one of input_shape or input_size")
        if input_size is None:
            input_size = input_shape[-1]
            if len(input_shape) == 4 and self.combine_dims:
                input_size = input_shape[2] * input_shape[3]
        self.input_size = input_size
        self.n_neurons = n_neurons
        self.min_pallas_rows = min_pallas_rows

        compute_dtype = jnp.dtype(compute_dtype)
        self.compute_dtype = compute_dtype
        # Tile defaults: bf16 compute gets a wide, lane-dense 512x1024 output
        # tile (fits v5e/v6e/v7x scoped VMEM with double-buffering); f32
        # compute (rare) uses 512x512.  tk=512 is a multiple of the 256-wide
        # v6e/v7x MXU and amortizes per-grid-step overhead.
        self.tm = 512 if tm is None else tm
        self.tn = (1024 if compute_dtype.itemsize <= 2 else 512) if tn is None else tn
        self.tk = 512 if tk is None else tk

        # Deterministic init mimicking nn.Linear (kaiming-uniform bounds).
        if key is None:
            key = jax.random.PRNGKey(0)
        kw, kb = jax.random.split(key)
        bound_w = 1.0 / math.sqrt(input_size)
        # Canonical (unpadded, f32) params; weight stored (K, N) == torch (N,K)^T.
        self.w = jax.random.uniform(kw, (input_size, n_neurons),
                                    minval=-bound_w, maxval=bound_w, dtype=dtype)
        if bias:
            self.b = jax.random.uniform(kb, (n_neurons,),
                                        minval=-bound_w, maxval=bound_w, dtype=dtype)
        else:
            self.b = None

        # --- Hoisted per-call work: pad + cast weight/bias ONCE at init. ---
        K, N = input_size, n_neurons
        tk_eff = min(self.tk, _round_up(K, 128))
        tn_eff = min(self.tn, _round_up(N, 128))
        Kp = _round_up(K, tk_eff)
        Np = _round_up(N, tn_eff)

        w_c = self.w.astype(compute_dtype)
        if (Kp, Np) != (K, N):
            w_c = jnp.pad(w_c, ((0, Kp - K), (0, Np - N)))
        self._w_pad = w_c

        b_src = self.b if self.b is not None else jnp.zeros((N,), jnp.float32)
        b_p = b_src.astype(jnp.float32).reshape(1, N)
        if Np != N:
            b_p = jnp.pad(b_p, ((0, 0), (0, Np - N)))
        self._b_pad = b_p

    def __call__(self, x):
        if x.ndim == 4 and self.combine_dims:
            x = x.reshape(x.shape[0], x.shape[1], x.shape[2] * x.shape[3])
        lead = x.shape[:-1]
        K = x.shape[-1]
        x2d = x.reshape(-1, K)
        M = x2d.shape[0]

        if M <= self.min_pallas_rows:
            # Tiny flattened batch: pallas_call fixed cost dominates; let XLA
            # fuse the (exact f32) matmul.
            y2d = x2d @ self.w
            if self.b is not None:
                y2d = y2d + self.b
        else:
            y2d = _linear_forward(x2d, self._w_pad, self._b_pad,
                                  tm=self.tm, tn=self.tn, tk=self.tk,
                                  n_out=self.n_neurons)
        return y2d.reshape(*lead, self.n_neurons)


if __name__ == "__main__":
    key = jax.random.PRNGKey(0)
    k_x, k_x4, k_x3, k_p1, k_p2, k_p3, k_p4 = jax.random.split(key, 7)

    # Case 1: small (batch, seq, hidden) input -> exact f32 fast path.
    B, T, H, N_OUT = 2, 8, 32, 64
    x = jax.random.normal(k_x, (B, T, H), dtype=jnp.float32)
    lin = LinearPallas(N_OUT, input_shape=(B, T, H), bias=True, key=k_p1)
    y = jax.block_until_ready(lin(x))
    assert y.shape == (B, T, N_OUT)
    assert jnp.allclose(y, x @ lin.w + lin.b, atol=1e-4, rtol=1e-4)

    # Case 2: 4-D input with combine_dims=True -> (B, C, H*W) then linear.
    B4, C4, H4, W4 = 2, 4, 16, 16
    x4 = jax.random.normal(k_x4, (B4, C4, H4, W4), dtype=jnp.float32)
    lin4 = LinearPallas(N_OUT, input_shape=(B4, C4, H4, W4),
                        bias=True, combine_dims=True, key=k_p2)
    y4 = jax.block_until_ready(lin4(x4))
    assert y4.shape == (B4, C4, N_OUT)
    y4_ref = x4.reshape(B4, C4, H4 * W4) @ lin4.w + lin4.b
    assert jnp.allclose(y4, y4_ref, atol=1e-4, rtol=1e-4)

    # Case 3: exercises the Pallas kernel (bf16 MXU path, multi-block grid,
    # K padding, direct f32-output accumulation, megacore j-split).
    B3, T3, H3, N3 = 4, 128, 640, 256
    x3 = jax.random.normal(k_x3, (B3, T3, H3), dtype=jnp.float32)
    lin3 = LinearPallas(N3, input_shape=(B3, T3, H3), bias=True, key=k_p3)
    y3 = jax.block_until_ready(lin3(x3))
    assert y3.shape == (B3, T3, N3)
    xb = x3.astype(jnp.bfloat16).astype(jnp.float32).reshape(-1, H3)
    wb = lin3.w.astype(jnp.bfloat16).astype(jnp.float32)
    y3_ref = xb @ wb + lin3.b
    assert jnp.allclose(y3.reshape(-1, N3), y3_ref, atol=1e-2, rtol=1e-2)

    # Case 4: kernel path without bias.
    lin_nb = LinearPallas(N3, input_shape=(B3, T3, H3), bias=False, key=k_p4)
    y_nb = jax.block_until_ready(lin_nb(x3))
    w_nb = lin_nb.w.astype(jnp.bfloat16).astype(jnp.float32)
    assert jnp.allclose(y_nb.reshape(-1, N3), xb @ w_nb, atol=1e-2, rtol=1e-2)

    print("KERNEL_OK")
</pallas_src>

<mosaic_0001>
module attributes {stable_mosaic.version = 11 : i64} {
  func.func @_linear_kernel_f32out(%arg0: i32, %arg1: i32, %arg2: i32, %arg3: memref<512x512xbf16, #tpu.memory_space<vmem>>, %arg4: memref<512x128xbf16, #tpu.memory_space<vmem>>, %arg5: memref<1x128xf32, #tpu.memory_space<vmem>>, %arg6: memref<512x128xf32, #tpu.memory_space<vmem>>) attributes {dimension_semantics = [#tpu.dimension_semantics<parallel>, #tpu.dimension_semantics<parallel>, #tpu.dimension_semantics<arbitrary>], iteration_bounds = array<i64: 1, 2, 2>, scalar_prefetch = 0 : i64, scratch_operands = 0 : i64, tpu.core_type = #tpu.core_type<tc>, window_params = [{transform_indices = @transform_0, window_bounds = array<i64: 512, 512>}, {transform_indices = @transform_1, window_bounds = array<i64: 512, 128>}, {transform_indices = @transform_2, window_bounds = array<i64: 1, 128>}, {transform_indices = @transform_3, window_bounds = array<i64: 512, 128>}]} {
    %c0_i32 = arith.constant 0 : i32
    %0 = arith.cmpi eq, %arg2, %c0_i32 : i32
    %1 = arith.extui %0 : i1 to i32
    %c0_i32_0 = arith.constant 0 : i32
    %2 = arith.cmpi ne, %1, %c0_i32_0 : i32
    scf.if %2 {
      %c0_8 = arith.constant 0 : index
      %c0_9 = arith.constant 0 : index
      %9 = vector.load %arg5[%c0_8, %c0_9] : memref<1x128xf32, #tpu.memory_space<vmem>>, vector<1x128xf32>
      %10 = vector.shape_cast %9 : vector<1x128xf32> to vector<1x128xf32>
      %11 = vector.broadcast %10 : vector<1x128xf32> to vector<512x128xf32>
      %c0_10 = arith.constant 0 : index
      %c0_11 = arith.constant 0 : index
      %12 = vector.load %arg6[%c0_10, %c0_11] : memref<512x128xf32, #tpu.memory_space<vmem>>, vector<512x128xf32>
      tpu.vector_store %arg6[%c0_10, %c0_11], %11 {strides = array<i32>} : memref<512x128xf32, #tpu.memory_space<vmem>>, vector<512x128xf32>,
    } else {
    }
    %c0 = arith.constant 0 : index
    %c0_1 = arith.constant 0 : index
    %3 = vector.load %arg6[%c0, %c0_1] : memref<512x128xf32, #tpu.memory_space<vmem>>, vector<512x128xf32>
    %c0_2 = arith.constant 0 : index
    %c0_3 = arith.constant 0 : index
    %4 = vector.load %arg3[%c0_2, %c0_3] : memref<512x512xbf16, #tpu.memory_space<vmem>>, vector<512x512xbf16>
    %c0_4 = arith.constant 0 : index
    %c0_5 = arith.constant 0 : index
    %5 = vector.load %arg4[%c0_4, %c0_5] : memref<512x128xbf16, #tpu.memory_space<vmem>>, vector<512x128xbf16>
    %cst = arith.constant dense<0.000000e+00> : vector<512x128xf32>
    %6 = tpu.matmul %4, %5, %cst {dimension_numbers = #tpu.dot_dimension_numbers<[1], [0], [0], [1], [0, 0, 1, 1], [], []>} : vector<512x512xbf16>, vector<512x128xbf16>, vector<512x128xf32> -> vector<512x128xf32>
    %7 = arith.addf %3, %6 : vector<512x128xf32>
    %c0_6 = arith.constant 0 : index
    %c0_7 = arith.constant 0 : index
    %8 = vector.load %arg6[%c0_6, %c0_7] : memref<512x128xf32, #tpu.memory_space<vmem>>, vector<512x128xf32>
    tpu.vector_store %arg6[%c0_6, %c0_7], %7 {strides = array<i32>} : memref<512x128xf32, #tpu.memory_space<vmem>>, vector<512x128xf32>,
    return
  }
  func.func @transform_0(%arg0: i32, %arg1: i32, %arg2: i32) -> (i32, i32) {
    %c0_i32 = arith.constant 0 : i32
    return %arg0, %arg2 : i32, i32
  }
  func.func @transform_1(%arg0: i32, %arg1: i32, %arg2: i32) -> (i32, i32) {
    %c0_i32 = arith.constant 0 : i32
    return %arg2, %arg1 : i32, i32
  }
  func.func @transform_2(%arg0: i32, %arg1: i32, %arg2: i32) -> (i32, i32) {
    %c0_i32 = arith.constant 0 : i32
    %c0_i32_0 = arith.constant 0 : i32
    return %c0_i32, %arg1 : i32, i32
  }
  func.func @transform_3(%arg0: i32, %arg1: i32, %arg2: i32) -> (i32, i32) {
    %c0_i32 = arith.constant 0 : i32
    return %arg0, %arg1 : i32, i32
  }
}

</mosaic_0001>

<bundles_post_ra>
// kernel: _linear_forward.1
= control target key start
LH: loop header
LB: loop body
LE: loop exit
PB: predicated region body
PF: predicated region fallthrough
CT: control target
= control target key end

     0   :  { %s4535_s0 = inlined_call_operand.vmem [shape: bf16[512,1024], index: 0, kind: input, shape index: {}]   ;;  %s4536_s1 = inlined_call_operand.vmem [shape: bf16[1024,256], index: 1, kind: input, shape index: {}]   ;;  %s4537_s2 = inlined_call_operand.vmem [shape: f32[1,256], index: 2, kind: input, shape index: {}]   ;;  %s4538_s3 = inlined_call_operand.hbm [shape: f32[512,256], index: 3, kind: output, shape index: {}]  }
   0x1   :  { %4542 = sst [smem:[#allocation10_spill]] %s4535_s0 }
   0x2   :  { %4543 = sst [smem:[#allocation11_spill]] %s4536_s1 }
   0x3   :  { %8 = vsyncpa [#allocation5], 0 }
   0x4   :  { %10 = vsyncpa [#allocation5 + $0x1], 0  ;;  %s3474_s12 = smov 0   ;;  %s3476_s13 = smov 0  }
   0x5   :  { %s3478_s14 = smov 0   ;;  %s3480_s15 = smov 0  }
   0x6   :  { %s3482_s16 = smov 0   ;;  %s3484_s17 = smov 0  }
   0x7   :  { %s3486_s18 = smov 0   ;;  %s3488_s19 = smov 0  }
   0x8   :  { %s3490_s20 = smov 0   ;;  %s3492_s21 = smov 0  }
   0x9   :  { %s3494_s22 = smov 0   ;;  %s3496_s23 = smov 0  }
   0xa LB: > { %4544 = sst [smem:[#allocation7_spill]] %s3443_s22  ;;  %s2809_s24 = sadd.s32 4294967295, %s3447_s23   ;;  %s3447_s23 = sphi %s3496_s23, %s16_s23   ;;  %s3443_s22 = sphi %s3494_s22, %s4555_s22   ;;  %s3439_s21 = sphi %s3492_s21, %s4564_s21   ;;  %s3435_s20 = sphi %s3490_s20, %s4553_s20   ;;  %s3431_s19 = sphi %s3488_s19, %s4563_s19   ;;  %s3427_s18 = sphi %s3486_s18, %s4562_s18   ;;  %s3423_s17 = sphi %s3484_s17, %s4561_s17   ;;  %s3419_s16 = sphi %s3482_s16, %s4560_s16   ;;  %s3415_s15 = sphi %s3480_s15, %s4559_s15   ;;  %s3411_s14 = sphi %s3478_s14, %s4558_s14   ;;  %s3407_s13 = sphi %s3476_s13, %s4557_s13   ;;  %s3403_s12 = sphi %s3474_s12, %s4556_s12  }
   0xb   : > { %s2810_s25 = sadd.s32 4294967294, %s3447_s23   ;;  %s28_s26 = sadd.s32 1, %s3439_s21 }
   0xc   : > { %s31_s27 = sadd.s32 1, %s3443_s22  ;;  %p29_p0 = scmp.ge.s32.totalorder %s28_s26, 2 }
   0xd   : > { %s44_s28 = sadd.s32 1, %s3427_s18  ;;  %p51_p1 = scmp.ne.s32.totalorder %s3427_s18, %s3423_s17 }
   0xe   : > { %p52_p2 = scmp.eq.s32.totalorder %s3447_s23, 0  ;;  %s4566_s26 = smov (%p29_p0, %s28_s26), 0 }
   0xf   : > { %4545 = sst [smem:[#allocation8_spill]] %s4566_s26  ;;  %s4568_s27 = smov (!%p29_p0, %s31_s27), %s3443_s22 }
  0x10   : > { %s40_s29 = ssub.s32 %s3439_s21, %s4566_s26  ;;  %p3547_p3 = por %p52_p2, %p51_p1 }
  0x11   : > { %p33_p4 = scmp.ge.s32.totalorder %s4568_s27, 2  ;;  %p42_p5 = scmp.eq.s32.totalorder %s40_s29, 0 }
  0x12   : > { %s72_s4 = sadd.s32 1, %s3419_s16  ;;  %p79_p6 = scmp.ne.s32.totalorder %s3419_s16, %s3415_s15 }
  0x13   : > { %s4570_s27 = smov (%p33_p4, %s4568_s27), 0  ;;  %s126_s9 = sadd.s32 1, %s3411_s14 }
  0x14   : > { %4547 = sst [smem:[#allocation9_spill]] %s4570_s27  ;;  %s68_s6 = ssub.s32 %s3443_s22, %s4570_s27 }
  0x15   : > { %s3557_s5 = scalar_select %p42_p5, %s3427_s18, %s44_s28  }
  0x16   : > { %p3561_p7 = por %p79_p6, %p52_p2  ;;  %s69_s8 = sor.u32 %s68_s6, %s40_s29 }
  0x17   : > { %p124_p8 = scmp.eq.s32.totalorder %s68_s6, 0  ;;  %p70_p9 = scmp.eq.s32.totalorder %s69_s8, 0 }
  0x18   : > { %p136_p10 = scmp.ne.s32.totalorder %s3411_s14, %s3407_s13  ;;  %p137_p11 = scmp.eq.s32.totalorder %s2809_s24, 3 }
  0x19   : > { %s3567_s10 = scalar_select %p124_p8, %s3411_s14, %s126_s9  }
  0x1a   : > { %s3570_s11 = scalar_select %p70_p9, %s3419_s16, %s72_s4  }
  0x1b   : > { %p142_p12 = scmp.ne.s32.totalorder %s3407_s13, %s3403_s12  ;;  %p143_p13 = scmp.eq.s32.totalorder %s2810_s25, 3 }
  0x1c   : > { %p3576_p0 = por %p137_p11, %p136_p10  ;;  %p2812_p2 = scmp.ge.s32.totalorder %s3447_s23, 4 }
  0x1d   : > { %p3580_p1 = por %p143_p13, %p142_p12 }
  0x1e   : > { %159 = sbr.rel (%p2812_p2) target bundleno = 161 (0xa1), region = 16 }
  0x23   : > { %162 = sbr.rel (!%p3547_p3) target bundleno = 109 (0x6d), region = 20  ;;  %s164_s29 = sand.u32 (%p3547_p3), 1, %s3427_s18  }
  0x24   : > { %s2990_s24 = sshll.u32 (%p3547_p3), %s3439_s21, 4  ;;  %s2813_s4 = sshll.u32 (%p3547_p3), %s164_s29, 10 }
  0x25   : > { %s4551_s0 = sld [smem:[#allocation10_spill]] (%p3547_p3)  ;;  %s3597_s30 = scalar_lea.vmem (%p3547_p3), [#allocation2], %s2813_s4 }
  0x2b   : > { %s3592_s8 = scalar_lea.vmem %s4551_s0, %s2990_s24 }
  0x2c   : > { %v185_v0 = vld [vmem:[%s3592_s8] sm:$0xff]  ;;  %v187_v1 = vld [vmem:[%s3592_s8 + $0x8] sm:$0xff] }
  0x2d   : > { %v189_v2 = vld [vmem:[%s3592_s8 + $0x20] sm:$0xff]  ;;  %186 = vst [vmem:[%s3597_s30] sm:$0xff] %v185_v0  ;;  %188 = vst [vmem:[%s3597_s30 + $0x8] sm:$0xff] %v187_v1  ;;  %v191_v3 = vld [vmem:[%s3592_s8 + $0x28] sm:$0xff] }
  0x2e   : > { %190 = vst [vmem:[%s3597_s30 + $0x10] sm:$0xff] %v189_v2  ;;  %v193_v4 = vld [vmem:[%s3592_s8 + $0x40] sm:$0xff]  ;;  %v195_v5 = vld [vmem:[%s3592_s8 + $0x48] sm:$0xff]  ;;  %192 = vst [vmem:[%s3597_s30 + $0x18] sm:$0xff] %v191_v3 }
  0x2f   : > { %194 = vst [vmem:[%s3597_s30 + $0x20] sm:$0xff] %v193_v4  ;;  %196 = vst [vmem:[%s3597_s30 + $0x28] sm:$0xff] %v195_v5  ;;  %v197_v6 = vld [vmem:[%s3592_s8 + $0x60] sm:$0xff]  ;;  %v199_v7 = vld [vmem:[%s3592_s8 + $0x68] sm:$0xff] }
  0x30   : > { %v201_v8 = vld [vmem:[%s3592_s8 + $0x80] sm:$0xff]  ;;  %198 = vst [vmem:[%s3597_s30 + $0x30] sm:$0xff] %v197_v6  ;;  %200 = vst [vmem:[%s3597_s30 + $0x38] sm:$0xff] %v199_v7  ;;  %v203_v9 = vld [vmem:[%s3592_s8 + $0x88] sm:$0xff] }
  0x31   : > { %202 = vst [vmem:[%s3597_s30 + $0x40] sm:$0xff] %v201_v8  ;;  %v205_v10 = vld [vmem:[%s3592_s8 + $0xa0] sm:$0xff]  ;;  %v207_v11 = vld [vmem:[%s3592_s8 + $0xa8] sm:$0xff]  ;;  %204 = vst [vmem:[%s3597_s30 + $0x48] sm:$0xff] %v203_v9 }
  0x32   : > { %206 = vst [vmem:[%s3597_s30 + $0x50] sm:$0xff] %v205_v10  ;;  %208 = vst [vmem:[%s3597_s30 + $0x58] sm:$0xff] %v207_v11  ;;  %v209_v12 = vld [vmem:[%s3592_s8 + $0xc0] sm:$0xff]  ;;  %v211_v13 = vld [vmem:[%s3592_s8 + $0xc8] sm:$0xff] }
  0x33   : > { %v213_v14 = vld [vmem:[%s3592_s8 + $0xe0] sm:$0xff]  ;;  %210 = vst [vmem:[%s3597_s30 + $0x60] sm:$0xff] %v209_v12  ;;  %212 = vst [vmem:[%s3597_s30 + $0x68] sm:$0xff] %v211_v13  ;;  %v215_v15 = vld [vmem:[%s3592_s8 + $0xe8] sm:$0xff] }
  0x34   : > { %214 = vst [vmem:[%s3597_s30 + $0x70] sm:$0xff] %v213_v14  ;;  %v217_v16 = vld [vmem:[%s3592_s8 + $0x100] sm:$0xff]  ;;  %v219_v17 = vld [vmem:[%s3592_s8 + $0x108] sm:$0xff]  ;;  %216 = vst [vmem:[%s3597_s30 + $0x78] sm:$0xff] %v215_v15 }
  0x35   : > { %218 = vst [vmem:[%s3597_s30 + $0x80] sm:$0xff] %v217_v16  ;;  %220 = vst [vmem:[%s3597_s30 + $0x88] sm:$0xff] %v219_v17  ;;  %v221_v18 = vld [vmem:[%s3592_s8 + $0x120] sm:$0xff]  ;;  %v223_v19 = vld [vmem:[%s3592_s8 + $0x128] sm:$0xff] }
  0x36   : > { %v225_v20 = vld [vmem:[%s3592_s8 + $0x140] sm:$0xff]  ;;  %222 = vst [vmem:[%s3597_s30 + $0x90] sm:$0xff] %v221_v18  ;;  %224 = vst [vmem:[%s3597_s30 + $0x98] sm:$0xff] %v223_v19  ;;  %v227_v21 = vld [vmem:[%s3592_s8 + $0x148] sm:$0xff] }
  0x37   : > { %226 = vst [vmem:[%s3597_s30 + $0xa0] sm:$0xff] %v225_v20  ;;  %v229_v22 = vld [vmem:[%s3592_s8 + $0x160] sm:$0xff]  ;;  %v231_v23 = vld [vmem:[%s3592_s8 + $0x168] sm:$0xff]  ;;  %228 = vst [vmem:[%s3597_s30 + $0xa8] sm:$0xff] %v227_v21 }
  0x38   : > { %230 = vst [vmem:[%s3597_s30 + $0xb0] sm:$0xff] %v229_v22  ;;  %232 = vst [vmem:[%s3597_s30 + $0xb8] sm:$0xff] %v231_v23  ;;  %v233_v24 = vld [vmem:[%s3592_s8 + $0x180] sm:$0xff]  ;;  %v235_v25 = vld [vmem:[%s3592_s8 + $0x188] sm:$0xff] }
  0x39   : > { %v237_v26 = vld [vmem:[%s3592_s8 + $0x1a0] sm:$0xff]  ;;  %234 = vst [vmem:[%s3597_s30 + $0xc0] sm:$0xff] %v233_v24  ;;  %236 = vst [vmem:[%s3597_s30 + $0xc8] sm:$0xff] %v235_v25  ;;  %v239_v27 = vld [vmem:[%s3592_s8 + $0x1a8] sm:$0xff] }
  0x3a   : > { %238 = vst [vmem:[%s3597_s30 + $0xd0] sm:$0xff] %v237_v26  ;;  %v241_v28 = vld [vmem:[%s3592_s8 + $0x1c0] sm:$0xff]  ;;  %v243_v29 = vld [vmem:[%s3592_s8 + $0x1c8] sm:$0xff]  ;;  %240 = vst [vmem:[%s3597_s30 + $0xd8] sm:$0xff] %v239_v27 }
  0x3b   : > { %242 = vst [vmem:[%s3597_s30 + $0xe0] sm:$0xff] %v241_v28  ;;  %244 = vst [vmem:[%s3597_s30 + $0xe8] sm:$0xff] %v243_v29  ;;  %v245_v30 = vld [vmem:[%s3592_s8 + $0x1e0] sm:$0xff]  ;;  %v247_v31 = vld [vmem:[%s3592_s8 + $0x1e8] sm:$0xff] }
  0x3c   : > { %v249_v32 = vld [vmem:[%s3592_s8 + $0x200] sm:$0xff]  ;;  %246 = vst [vmem:[%s3597_s30 + $0xf0] sm:$0xff] %v245_v30  ;;  %248 = vst [vmem:[%s3597_s30 + $0xf8] sm:$0xff] %v247_v31  ;;  %v251_v33 = vld [vmem:[%s3592_s8 + $0x208] sm:$0xff] }
  0x3d   : > { %250 = vst [vmem:[%s3597_s30 + $0x100] sm:$0xff] %v249_v32  ;;  %v253_v34 = vld [vmem:[%s3592_s8 + $0x220] sm:$0xff]  ;;  %v255_v35 = vld [vmem:[%s3592_s8 + $0x228] sm:$0xff]  ;;  %252 = vst [vmem:[%s3597_s30 + $0x108] sm:$0xff] %v251_v33 }
  0x3e   : > { %254 = vst [vmem:[%s3597_s30 + $0x110] sm:$0xff] %v253_v34  ;;  %256 = vst [vmem:[%s3597_s30 + $0x118] sm:$0xff] %v255_v35  ;;  %v257_v36 = vld [vmem:[%s3592_s8 + $0x240] sm:$0xff]  ;;  %v259_v37 = vld [vmem:[%s3592_s8 + $0x248] sm:$0xff] }
  0x3f   : > { %v261_v38 = vld [vmem:[%s3592_s8 + $0x260] sm:$0xff]  ;;  %258 = vst [vmem:[%s3597_s30 + $0x120] sm:$0xff] %v257_v36  ;;  %260 = vst [vmem:[%s3597_s30 + $0x128] sm:$0xff] %v259_v37  ;;  %v263_v39 = vld [vmem:[%s3592_s8 + $0x268] sm:$0xff] }
  0x40   : > { %262 = vst [vmem:[%s3597_s30 + $0x130] sm:$0xff] %v261_v38  ;;  %v265_v40 = vld [vmem:[%s3592_s8 + $0x280] sm:$0xff]  ;;  %v267_v41 = vld [vmem:[%s3592_s8 + $0x288] sm:$0xff]  ;;  %264 = vst [vmem:[%s3597_s30 + $0x138] sm:$0xff] %v263_v39 }
  0x41   : > { %266 = vst [vmem:[%s3597_s30 + $0x140] sm:$0xff] %v265_v40  ;;  %268 = vst [vmem:[%s3597_s30 + $0x148] sm:$0xff] %v267_v41  ;;  %v269_v42 = vld [vmem:[%s3592_s8 + $0x2a0] sm:$0xff]  ;;  %v271_v43 = vld [vmem:[%s3592_s8 + $0x2a8] sm:$0xff] }
  0x42   : > { %v273_v44 = vld [vmem:[%s3592_s8 + $0x2c0] sm:$0xff]  ;;  %270 = vst [vmem:[%s3597_s30 + $0x150] sm:$0xff] %v269_v42  ;;  %272 = vst [vmem:[%s3597_s30 + $0x158] sm:$0xff] %v271_v43  ;;  %v275_v45 = vld [vmem:[%s3592_s8 + $0x2c8] sm:$0xff] }
  0x43   : > { %274 = vst [vmem:[%s3597_s30 + $0x160] sm:$0xff] %v273_v44  ;;  %v277_v46 = vld [vmem:[%s3592_s8 + $0x2e0] sm:$0xff]  ;;  %v279_v47 = vld [vmem:[%s3592_s8 + $0x2e8] sm:$0xff]  ;;  %276 = vst [vmem:[%s3597_s30 + $0x168] sm:$0xff] %v275_v45 }
  0x44   : > { %278 = vst [vmem:[%s3597_s30 + $0x170] sm:$0xff] %v277_v46  ;;  %280 = vst [vmem:[%s3597_s30 + $0x178] sm:$0xff] %v279_v47  ;;  %v281_v48 = vld [vmem:[%s3592_s8 + $0x300] sm:$0xff]  ;;  %v283_v49 = vld [vmem:[%s3592_s8 + $0x308] sm:$0xff] }
  0x45   : > { %v285_v50 = vld [vmem:[%s3592_s8 + $0x320] sm:$0xff]  ;;  %282 = vst [vmem:[%s3597_s30 + $0x180] sm:$0xff] %v281_v48  ;;  %284 = vst [vmem:[%s3597_s30 + $0x188] sm:$0xff] %v283_v49  ;;  %v287_v51 = vld [vmem:[%s3592_s8 + $0x328] sm:$0xff] }
  0x46   : > { %286 = vst [vmem:[%s3597_s30 + $0x190] sm:$0xff] %v285_v50  ;;  %v289_v52 = vld [vmem:[%s3592_s8 + $0x340] sm:$0xff]  ;;  %v291_v53 = vld [vmem:[%s3592_s8 + $0x348] sm:$0xff]  ;;  %288 = vst [vmem:[%s3597_s30 + $0x198] sm:$0xff] %v287_v51 }
  0x47   : > { %290 = vst [vmem:[%s3597_s30 + $0x1a0] sm:$0xff] %v289_v52  ;;  %292 = vst [vmem:[%s3597_s30 + $0x1a8] sm:$0xff] %v291_v53  ;;  %v293_v54 = vld [vmem:[%s3592_s8 + $0x360] sm:$0xff]  ;;  %v295_v55 = vld [vmem:[%s3592_s8 + $0x368] sm:$0xff] }
  0x48   : > { %v297_v56 = vld [vmem:[%s3592_s8 + $0x380] sm:$0xff]  ;;  %294 = vst [vmem:[%s3597_s30 + $0x1b0] sm:$0xff] %v293_v54  ;;  %296 = vst [vmem:[%s3597_s30 + $0x1b8] sm:$0xff] %v295_v55  ;;  %v299_v57 = vld [vmem:[%s3592_s8 + $0x388] sm:$0xff] }
  0x49   : > { %298 = vst [vmem:[%s3597_s30 + $0x1c0] sm:$0xff] %v297_v56  ;;  %v301_v58 = vld [vmem:[%s3592_s8 + $0x3a0] sm:$0xff]  ;;  %v303_v59 = vld [vmem:[%s3592_s8 + $0x3a8] sm:$0xff]  ;;  %300 = vst [vmem:[%s3597_s30 + $0x1c8] sm:$0xff] %v299_v57 }
  0x4a   : > { %302 = vst [vmem:[%s3597_s30 + $0x1d0] sm:$0xff] %v301_v58  ;;  %304 = vst [vmem:[%s3597_s30 + $0x1d8] sm:$0xff] %v303_v59  ;;  %v305_v60 = vld [vmem:[%s3592_s8 + $0x3c0] sm:$0xff]  ;;  %v307_v61 = vld [vmem:[%s3592_s8 + $0x3c8] sm:$0xff] }
  0x4b   : > { %v309_v62 = vld [vmem:[%s3592_s8 + $0x3e0] sm:$0xff]  ;;  %306 = vst [vmem:[%s3597_s30 + $0x1e0] sm:$0xff] %v305_v60  ;;  %308 = vst [vmem:[%s3597_s30 + $0x1e8] sm:$0xff] %v307_v61  ;;  %v311_v63 = vld [vmem:[%s3592_s8 + $0x3e8] sm:$0xff] }
  0x4c   : > { %310 = vst [vmem:[%s3597_s30 + $0x1f0] sm:$0xff] %v309_v62  ;;  %v313_v0 = vld [vmem:[%s3592_s8 + $0x400] sm:$0xff]  ;;  %v315_v1 = vld [vmem:[%s3592_s8 + $0x408] sm:$0xff]  ;;  %312 = vst [vmem:[%s3597_s30 + $0x1f8] sm:$0xff] %v311_v63 }
  0x4d   : > { %314 = vst [vmem:[%s3597_s30 + $0x200] sm:$0xff] %v313_v0  ;;  %316 = vst [vmem:[%s3597_s30 + $0x208] sm:$0xff] %v315_v1  ;;  %v317_v2 = vld [vmem:[%s3592_s8 + $0x420] sm:$0xff]  ;;  %v319_v3 = vld [vmem:[%s3592_s8 + $0x428] sm:$0xff] }
  0x4e   : > { %v321_v4 = vld [vmem:[%s3592_s8 + $0x440] sm:$0xff]  ;;  %318 = vst [vmem:[%s3597_s30 + $0x210] sm:$0xff] %v317_v2  ;;  %320 = vst [vmem:[%s3597_s30 + $0x218] sm:$0xff] %v319_v3  ;;  %v323_v5 = vld [vmem:[%s3592_s8 + $0x448] sm:$0xff] }
  0x4f   : > { %322 = vst [vmem:[%s3597_s30 + $0x220] sm:$0xff] %v321_v4  ;;  %v325_v6 = vld [vmem:[%s3592_s8 + $0x460] sm:$0xff]  ;;  %v327_v7 = vld [vmem:[%s3592_s8 + $0x468] sm:$0xff]  ;;  %324 = vst [vmem:[%s3597_s30 + $0x228] sm:$0xff] %v323_v5 }
  0x50   : > { %326 = vst [vmem:[%s3597_s30 + $0x230] sm:$0xff] %v325_v6  ;;  %328 = vst [vmem:[%s3597_s30 + $0x238] sm:$0xff] %v327_v7  ;;  %v329_v8 = vld [vmem:[%s3592_s8 + $0x480] sm:$0xff]  ;;  %v331_v9 = vld [vmem:[%s3592_s8 + $0x488] sm:$0xff] }
  0x51   : > { %v333_v10 = vld [vmem:[%s3592_s8 + $0x4a0] sm:$0xff]  ;;  %330 = vst [vmem:[%s3597_s30 + $0x240] sm:$0xff] %v329_v8  ;;  %332 = vst [vmem:[%s3597_s30 + $0x248] sm:$0xff] %v331_v9  ;;  %v335_v11 = vld [vmem:[%s3592_s8 + $0x4a8] sm:$0xff] }
  0x52   : > { %334 = vst [vmem:[%s3597_s30 + $0x250] sm:$0xff] %v333_v10  ;;  %v337_v12 = vld [vmem:[%s3592_s8 + $0x4c0] sm:$0xff]  ;;  %v339_v13 = vld [vmem:[%s3592_s8 + $0x4c8] sm:$0xff]  ;;  %336 = vst [vmem:[%s3597_s30 + $0x258] sm:$0xff] %v335_v11 }
  0x53   : > { %338 = vst [vmem:[%s3597_s30 + $0x260] sm:$0xff] %v337_v12  ;;  %340 = vst [vmem:[%s3597_s30 + $0x268] sm:$0xff] %v339_v13  ;;  %v341_v14 = vld [vmem:[%s3592_s8 + $0x4e0] sm:$0xff]  ;;  %v343_v15 = vld [vmem:[%s3592_s8 + $0x4e8] sm:$0xff] }
  0x54   : > { %v345_v16 = vld [vmem:[%s3592_s8 + $0x500] sm:$0xff]  ;;  %342 = vst [vmem:[%s3597_s30 + $0x270] sm:$0xff] %v341_v14  ;;  %344 = vst [vmem:[%s3597_s30 + $0x278] sm:$0xff] %v343_v15  ;;  %v347_v17 = vld [vmem:[%s3592_s8 + $0x508] sm:$0xff] }
  0x55   : > { %346 = vst [vmem:[%s3597_s30 + $0x280] sm:$0xff] %v345_v16  ;;  %v349_v18 = vld [vmem:[%s3592_s8 + $0x520] sm:$0xff]  ;;  %v351_v19 = vld [vmem:[%s3592_s8 + $0x528] sm:$0xff]  ;;  %348 = vst [vmem:[%s3597_s30 + $0x288] sm:$0xff] %v347_v17 }
  0x56   : > { %350 = vst [vmem:[%s3597_s30 + $0x290] sm:$0xff] %v349_v18  ;;  %352 = vst [vmem:[%s3597_s30 + $0x298] sm:$0xff] %v351_v19  ;;  %v353_v20 = vld [vmem:[%s3592_s8 + $0x540] sm:$0xff]  ;;  %v355_v21 = vld [vmem:[%s3592_s8 + $0x548] sm:$0xff] }
  0x57   : > { %v357_v22 = vld [vmem:[%s3592_s8 + $0x560] sm:$0xff]  ;;  %354 = vst [vmem:[%s3597_s30 + $0x2a0] sm:$0xff] %v353_v20  ;;  %356 = vst [vmem:[%s3597_s30 + $0x2a8] sm:$0xff] %v355_v21  ;;  %v359_v23 = vld [vmem:[%s3592_s8 + $0x568] sm:$0xff] }
  0x58   : > { %358 = vst [vmem:[%s3597_s30 + $0x2b0] sm:$0xff] %v357_v22  ;;  %v361_v24 = vld [vmem:[%s3592_s8 + $0x580] sm:$0xff]  ;;  %v363_v25 = vld [vmem:[%s3592_s8 + $0x588] sm:$0xff]  ;;  %360 = vst [vmem:[%s3597_s30 + $0x2b8] sm:$0xff] %v359_v23 }
  0x59   : > { %362 = vst [vmem:[%s3597_s30 + $0x2c0] sm:$0xff] %v361_v24  ;;  %364 = vst [vmem:[%s3597_s30 + $0x2c8] sm:$0xff] %v363_v25  ;;  %v365_v26 = vld [vmem:[%s3592_s8 + $0x5a0] sm:$0xff]  ;;  %v367_v27 = vld [vmem:[%s3592_s8 + $0x5a8] sm:$0xff] }
  0x5a   : > { %v369_v28 = vld [vmem:[%s3592_s8 + $0x5c0] sm:$0xff]  ;;  %366 = vst [vmem:[%s3597_s30 + $0x2d0] sm:$0xff] %v365_v26  ;;  %368 = vst [vmem:[%s3597_s30 + $0x2d8] sm:$0xff] %v367_v27  ;;  %v371_v29 = vld [vmem:[%s3592_s8 + $0x5c8] sm:$0xff] }
  0x5b   : > { %370 = vst [vmem:[%s3597_s30 + $0x2e0] sm:$0xff] %v369_v28  ;;  %v373_v30 = vld [vmem:[%s3592_s8 + $0x5e0] sm:$0xff]  ;;  %v375_v31 = vld [vmem:[%s3592_s8 + $0x5e8] sm:$0xff]  ;;  %372 = vst [vmem:[%s3597_s30 + $0x2e8] sm:$0xff] %v371_v29 }
  0x5c   : > { %374 = vst [vmem:[%s3597_s30 + $0x2f0] sm:$0xff] %v373_v30  ;;  %376 = vst [vmem:[%s3597_s30 + $0x2f8] sm:$0xff] %v375_v31  ;;  %v377_v32 = vld [vmem:[%s3592_s8 + $0x600] sm:$0xff]  ;;  %v379_v33 = vld [vmem:[%s3592_s8 + $0x608] sm:$0xff] }
  0x5d   : > { %v381_v34 = vld [vmem:[%s3592_s8 + $0x620] sm:$0xff]  ;;  %378 = vst [vmem:[%s3597_s30 + $0x300] sm:$0xff] %v377_v32  ;;  %380 = vst [vmem:[%s3597_s30 + $0x308] sm:$0xff] %v379_v33  ;;  %v383_v35 = vld [vmem:[%s3592_s8 + $0x628] sm:$0xff] }
  0x5e   : > { %382 = vst [vmem:[%s3597_s30 + $0x310] sm:$0xff] %v381_v34  ;;  %v385_v36 = vld [vmem:[%s3592_s8 + $0x640] sm:$0xff]  ;;  %v387_v37 = vld [vmem:[%s3592_s8 + $0x648] sm:$0xff]  ;;  %384 = vst [vmem:[%s3597_s30 + $0x318] sm:$0xff] %v383_v35 }
  0x5f   : > { %386 = vst [vmem:[%s3597_s30 + $0x320] sm:$0xff] %v385_v36  ;;  %388 = vst [vmem:[%s3597_s30 + $0x328] sm:$0xff] %v387_v37  ;;  %v389_v38 = vld [vmem:[%s3592_s8 + $0x660] sm:$0xff]  ;;  %v391_v39 = vld [vmem:[%s3592_s8 + $0x668] sm:$0xff] }
  0x60   : > { %v393_v40 = vld [vmem:[%s3592_s8 + $0x680] sm:$0xff]  ;;  %390 = vst [vmem:[%s3597_s30 + $0x330] sm:$0xff] %v389_v38  ;;  %392 = vst [vmem:[%s3597_s30 + $0x338] sm:$0xff] %v391_v39  ;;  %v395_v41 = vld [vmem:[%s3592_s8 + $0x688] sm:$0xff] }
  0x61   : > { %394 = vst [vmem:[%s3597_s30 + $0x340] sm:$0xff] %v393_v40  ;;  %v397_v42 = vld [vmem:[%s3592_s8 + $0x6a0] sm:$0xff]  ;;  %v399_v43 = vld [vmem:[%s3592_s8 + $0x6a8] sm:$0xff]  ;;  %396 = vst [vmem:[%s3597_s30 + $0x348] sm:$0xff] %v395_v41 }
  0x62   : > { %398 = vst [vmem:[%s3597_s30 + $0x350] sm:$0xff] %v397_v42  ;;  %400 = vst [vmem:[%s3597_s30 + $0x358] sm:$0xff] %v399_v43  ;;  %v401_v44 = vld [vmem:[%s3592_s8 + $0x6c0] sm:$0xff]  ;;  %v403_v45 = vld [vmem:[%s3592_s8 + $0x6c8] sm:$0xff] }
  0x63   : > { %v405_v46 = vld [vmem:[%s3592_s8 + $0x6e0] sm:$0xff]  ;;  %402 = vst [vmem:[%s3597_s30 + $0x360] sm:$0xff] %v401_v44  ;;  %404 = vst [vmem:[%s3597_s30 + $0x368] sm:$0xff] %v403_v45  ;;  %v407_v47 = vld [vmem:[%s3592_s8 + $0x6e8] sm:$0xff] }
  0x64   : > { %406 = vst [vmem:[%s3597_s30 + $0x370] sm:$0xff] %v405_v46  ;;  %v409_v48 = vld [vmem:[%s3592_s8 + $0x700] sm:$0xff]  ;;  %v411_v49 = vld [vmem:[%s3592_s8 + $0x708] sm:$0xff]  ;;  %408 = vst [vmem:[%s3597_s30 + $0x378] sm:$0xff] %v407_v47 }
  0x65   : > { %410 = vst [vmem:[%s3597_s30 + $0x380] sm:$0xff] %v409_v48  ;;  %412 = vst [vmem:[%s3597_s30 + $0x388] sm:$0xff] %v411_v49  ;;  %v413_v50 = vld [vmem:[%s3592_s8 + $0x720] sm:$0xff]  ;;  %v415_v51 = vld [vmem:[%s3592_s8 + $0x728] sm:$0xff] }
  0x66   : > { %v417_v52 = vld [vmem:[%s3592_s8 + $0x740] sm:$0xff]  ;;  %414 = vst [vmem:[%s3597_s30 + $0x390] sm:$0xff] %v413_v50  ;;  %416 = vst [vmem:[%s3597_s30 + $0x398] sm:$0xff] %v415_v51  ;;  %v419_v53 = vld [vmem:[%s3592_s8 + $0x748] sm:$0xff] }
  0x67   : > { %418 = vst [vmem:[%s3597_s30 + $0x3a0] sm:$0xff] %v417_v52  ;;  %v421_v54 = vld [vmem:[%s3592_s8 + $0x760] sm:$0xff]  ;;  %v423_v55 = vld [vmem:[%s3592_s8 + $0x768] sm:$0xff]  ;;  %420 = vst [vmem:[%s3597_s30 + $0x3a8] sm:$0xff] %v419_v53 }
  0x68   : > { %422 = vst [vmem:[%s3597_s30 + $0x3b0] sm:$0xff] %v421_v54  ;;  %424 = vst [vmem:[%s3597_s30 + $0x3b8] sm:$0xff] %v423_v55  ;;  %v425_v56 = vld [vmem:[%s3592_s8 + $0x780] sm:$0xff]  ;;  %v427_v57 = vld [vmem:[%s3592_s8 + $0x788] sm:$0xff] }
  0x69   : > { %v429_v58 = vld [vmem:[%s3592_s8 + $0x7a0] sm:$0xff]  ;;  %426 = vst [vmem:[%s3597_s30 + $0x3c0] sm:$0xff] %v425_v56  ;;  %428 = vst [vmem:[%s3597_s30 + $0x3c8] sm:$0xff] %v427_v57  ;;  %v431_v59 = vld [vmem:[%s3592_s8 + $0x7a8] sm:$0xff] }
  0x6a   : > { %430 = vst [vmem:[%s3597_s30 + $0x3d0] sm:$0xff] %v429_v58  ;;  %v433_v60 = vld [vmem:[%s3592_s8 + $0x7c0] sm:$0xff]  ;;  %v435_v61 = vld [vmem:[%s3592_s8 + $0x7c8] sm:$0xff]  ;;  %432 = vst [vmem:[%s3597_s30 + $0x3d8] sm:$0xff] %v431_v59 }
  0x6b   : > { %434 = vst [vmem:[%s3597_s30 + $0x3e0] sm:$0xff] %v433_v60  ;;  %436 = vst [vmem:[%s3597_s30 + $0x3e8] sm:$0xff] %v435_v61  ;;  %v437_v62 = vld [vmem:[%s3592_s8 + $0x7e0] sm:$0xff]  ;;  %v439_v63 = vld [vmem:[%s3592_s8 + $0x7e8] sm:$0xff] }
  0x6c   : > { %438 = vst [vmem:[%s3597_s30 + $0x3f0] sm:$0xff] %v437_v62  ;;  %440 = vst [vmem:[%s3597_s30 + $0x3f8] sm:$0xff] %v439_v63 }
  0x6d PF: > { %446 = sbr.rel (!%p3561_p7) target bundleno = 161 (0xa1), region = 43  ;;  %s448_s9 = sand.u32 (%p3561_p7), 1, %s3419_s16  }
  0x6e   : > { %s2991_s29 = sshll.u32 (%p3561_p7), %s3439_s21, 7  ;;  %s2816_s24 = sshll.u32 (%p3561_p7), %s448_s9, 8 }
  0x6f   : > { %s453_s4 = sadd.s32 (%p3561_p7), %s3443_s22, %s2991_s29  ;;  %s4552_s1 = sld [smem:[#allocation11_spill]] (%p3561_p7) }
  0x70   : > { %s2819_s25 = sshll.u32 (%p3561_p7), %s453_s4, 2  ;;  %s3865_s7 = scalar_lea.vmem (%p3561_p7), [#allocation3], %s2816_s24 }
  0x75   : > { %s3860_s26 = scalar_lea.vmem %s4552_s1, %s2819_s25 }
  0x76   : > { %v472_v0 = vld [vmem:[%s3860_s26] sm:$0xf]  ;;  %v474_v1 = vld [vmem:[%s3860_s26 + $0x8] sm:$0xf]  ;;  %v476_v2 = vld [vmem:[%s3860_s26 + $0x10] sm:$0xf] }
  0x77   : > { %473 = vst [vmem:[%s3865_s7] sm:$0xf] %v472_v0  ;;  %475 = vst [vmem:[%s3865_s7 + $0x4] sm:$0xf] %v474_v1  ;;  %v478_v3 = vld [vmem:[%s3860_s26 + $0x18] sm:$0xf] }
  0x78   : > { %477 = vst [vmem:[%s3865_s7 + $0x8] sm:$0xf] %v476_v2  ;;  %v480_v4 = vld [vmem:[%s3860_s26 + $0x20] sm:$0xf]  ;;  %v482_v5 = vld [vmem:[%s3860_s26 + $0x28] sm:$0xf] }
  0x79   : > { %479 = vst [vmem:[%s3865_s7 + $0xc] sm:$0xf] %v478_v3  ;;  %481 = vst [vmem:[%s3865_s7 + $0x10] sm:$0xf] %v480_v4  ;;  %v484_v6 = vld [vmem:[%s3860_s26 + $0x30] sm:$0xf] }
  0x7a   : > { %483 = vst [vmem:[%s3865_s7 + $0x14] sm:$0xf] %v482_v5  ;;  %v486_v7 = vld [vmem:[%s3860_s26 + $0x38] sm:$0xf]  ;;  %v488_v8 = vld [vmem:[%s3860_s26 + $0x40] sm:$0xf] }
  0x7b   : > { %485 = vst [vmem:[%s3865_s7 + $0x18] sm:$0xf] %v484_v6  ;;  %487 = vst [vmem:[%s3865_s7 + $0x1c] sm:$0xf] %v486_v7  ;;  %v490_v9 = vld [vmem:[%s3860_s26 + $0x48] sm:$0xf] }
  0x7c   : > { %489 = vst [vmem:[%s3865_s7 + $0x20] sm:$0xf] %v488_v8  ;;  %v492_v10 = vld [vmem:[%s3860_s26 + $0x50] sm:$0xf]  ;;  %v494_v11 = vld [vmem:[%s3860_s26 + $0x58] sm:$0xf] }
  0x7d   : > { %491 = vst [vmem:[%s3865_s7 + $0x24] sm:$0xf] %v490_v9  ;;  %493 = vst [vmem:[%s3865_s7 + $0x28] sm:$0xf] %v492_v10  ;;  %v496_v12 = vld [vmem:[%s3860_s26 + $0x60] sm:$0xf] }
  0x7e   : > { %495 = vst [vmem:[%s3865_s7 + $0x2c] sm:$0xf] %v494_v11  ;;  %v498_v13 = vld [vmem:[%s3860_s26 + $0x68] sm:$0xf]  ;;  %v500_v14 = vld [vmem:[%s3860_s26 + $0x70] sm:$0xf] }
  0x7f   : > { %497 = vst [vmem:[%s3865_s7 + $0x30] sm:$0xf] %v496_v12  ;;  %499 = vst [vmem:[%s3865_s7 + $0x34] sm:$0xf] %v498_v13  ;;  %v502_v15 = vld [vmem:[%s3860_s26 + $0x78] sm:$0xf] }
  0x80   : > { %501 = vst [vmem:[%s3865_s7 + $0x38] sm:$0xf] %v500_v14  ;;  %v504_v16 = vld [vmem:[%s3860_s26 + $0x80] sm:$0xf]  ;;  %v506_v17 = vld [vmem:[%s3860_s26 + $0x88] sm:$0xf] }
  0x81   : > { %503 = vst [vmem:[%s3865_s7 + $0x3c] sm:$0xf] %v502_v15  ;;  %505 = vst [vmem:[%s3865_s7 + $0x40] sm:$0xf] %v504_v16  ;;  %v508_v18 = vld [vmem:[%s3860_s26 + $0x90] sm:$0xf] }
  0x82   : > { %507 = vst [vmem:[%s3865_s7 + $0x44] sm:$0xf] %v506_v17  ;;  %v510_v19 = vld [vmem:[%s3860_s26 + $0x98] sm:$0xf]  ;;  %v512_v20 = vld [vmem:[%s3860_s26 + $0xa0] sm:$0xf] }
  0x83   : > { %509 = vst [vmem:[%s3865_s7 + $0x48] sm:$0xf] %v508_v18  ;;  %511 = vst [vmem:[%s3865_s7 + $0x4c] sm:$0xf] %v510_v19  ;;  %v514_v21 = vld [vmem:[%s3860_s26 + $0xa8] sm:$0xf] }
  0x84   : > { %513 = vst [vmem:[%s3865_s7 + $0x50] sm:$0xf] %v512_v20  ;;  %v516_v22 = vld [vmem:[%s3860_s26 + $0xb0] sm:$0xf]  ;;  %v518_v23 = vld [vmem:[%s3860_s26 + $0xb8] sm:$0xf] }
  0x85   : > { %515 = vst [vmem:[%s3865_s7 + $0x54] sm:$0xf] %v514_v21  ;;  %517 = vst [vmem:[%s3865_s7 + $0x58] sm:$0xf] %v516_v22  ;;  %v520_v24 = vld [vmem:[%s3860_s26 + $0xc0] sm:$0xf] }
  0x86   : > { %519 = vst [vmem:[%s3865_s7 + $0x5c] sm:$0xf] %v518_v23  ;;  %v522_v25 = vld [vmem:[%s3860_s26 + $0xc8] sm:$0xf]  ;;  %v524_v26 = vld [vmem:[%s3860_s26 + $0xd0] sm:$0xf] }
  0x87   : > { %521 = vst [vmem:[%s3865_s7 + $0x60] sm:$0xf] %v520_v24  ;;  %523 = vst [vmem:[%s3865_s7 + $0x64] sm:$0xf] %v522_v25  ;;  %v526_v27 = vld [vmem:[%s3860_s26 + $0xd8] sm:$0xf] }
  0x88   : > { %525 = vst [vmem:[%s3865_s7 + $0x68] sm:$0xf] %v524_v26  ;;  %v528_v28 = vld [vmem:[%s3860_s26 + $0xe0] sm:$0xf]  ;;  %v530_v29 = vld [vmem:[%s3860_s26 + $0xe8] sm:$0xf] }
  0x89   : > { %527 = vst [vmem:[%s3865_s7 + $0x6c] sm:$0xf] %v526_v27  ;;  %529 = vst [vmem:[%s3865_s7 + $0x70] sm:$0xf] %v528_v28  ;;  %v532_v30 = vld [vmem:[%s3860_s26 + $0xf0] sm:$0xf] }
  0x8a   : > { %531 = vst [vmem:[%s3865_s7 + $0x74] sm:$0xf] %v530_v29  ;;  %v534_v31 = vld [vmem:[%s3860_s26 + $0xf8] sm:$0xf]  ;;  %v536_v32 = vld [vmem:[%s3860_s26 + $0x100] sm:$0xf] }
  0x8b   : > { %533 = vst [vmem:[%s3865_s7 + $0x78] sm:$0xf] %v532_v30  ;;  %535 = vst [vmem:[%s3865_s7 + $0x7c] sm:$0xf] %v534_v31  ;;  %v538_v33 = vld [vmem:[%s3860_s26 + $0x108] sm:$0xf] }
  0x8c   : > { %537 = vst [vmem:[%s3865_s7 + $0x80] sm:$0xf] %v536_v32  ;;  %v540_v34 = vld [vmem:[%s3860_s26 + $0x110] sm:$0xf]  ;;  %v542_v35 = vld [vmem:[%s3860_s26 + $0x118] sm:$0xf] }
  0x8d   : > { %539 = vst [vmem:[%s3865_s7 + $0x84] sm:$0xf] %v538_v33  ;;  %541 = vst [vmem:[%s3865_s7 + $0x88] sm:$0xf] %v540_v34  ;;  %v544_v36 = vld [vmem:[%s3860_s26 + $0x120] sm:$0xf] }
  0x8e   : > { %543 = vst [vmem:[%s3865_s7 + $0x8c] sm:$0xf] %v542_v35  ;;  %v546_v37 = vld [vmem:[%s3860_s26 + $0x128] sm:$0xf]  ;;  %v548_v38 = vld [vmem:[%s3860_s26 + $0x130] sm:$0xf] }
  0x8f   : > { %545 = vst [vmem:[%s3865_s7 + $0x90] sm:$0xf] %v544_v36  ;;  %547 = vst [vmem:[%s3865_s7 + $0x94] sm:$0xf] %v546_v37  ;;  %v550_v39 = vld [vmem:[%s3860_s26 + $0x138] sm:$0xf] }
  0x90   : > { %549 = vst [vmem:[%s3865_s7 + $0x98] sm:$0xf] %v548_v38  ;;  %v552_v40 = vld [vmem:[%s3860_s26 + $0x140] sm:$0xf]  ;;  %v554_v41 = vld [vmem:[%s3860_s26 + $0x148] sm:$0xf] }
  0x91   : > { %551 = vst [vmem:[%s3865_s7 + $0x9c] sm:$0xf] %v550_v39  ;;  %553 = vst [vmem:[%s3865_s7 + $0xa0] sm:$0xf] %v552_v40  ;;  %v556_v42 = vld [vmem:[%s3860_s26 + $0x150] sm:$0xf] }
  0x92   : > { %555 = vst [vmem:[%s3865_s7 + $0xa4] sm:$0xf] %v554_v41  ;;  %v558_v43 = vld [vmem:[%s3860_s26 + $0x158] sm:$0xf]  ;;  %v560_v44 = vld [vmem:[%s3860_s26 + $0x160] sm:$0xf] }
  0x93   : > { %557 = vst [vmem:[%s3865_s7 + $0xa8] sm:$0xf] %v556_v42  ;;  %559 = vst [vmem:[%s3865_s7 + $0xac] sm:$0xf] %v558_v43  ;;  %v562_v45 = vld [vmem:[%s3860_s26 + $0x168] sm:$0xf] }
  0x94   : > { %561 = vst [vmem:[%s3865_s7 + $0xb0] sm:$0xf] %v560_v44  ;;  %v564_v46 = vld [vmem:[%s3860_s26 + $0x170] sm:$0xf]  ;;  %v566_v47 = vld [vmem:[%s3860_s26 + $0x178] sm:$0xf] }
  0x95   : > { %563 = vst [vmem:[%s3865_s7 + $0xb4] sm:$0xf] %v562_v45  ;;  %565 = vst [vmem:[%s3865_s7 + $0xb8] sm:$0xf] %v564_v46  ;;  %v568_v48 = vld [vmem:[%s3860_s26 + $0x180] sm:$0xf] }
  0x96   : > { %567 = vst [vmem:[%s3865_s7 + $0xbc] sm:$0xf] %v566_v47  ;;  %v570_v49 = vld [vmem:[%s3860_s26 + $0x188] sm:$0xf]  ;;  %v572_v50 = vld [vmem:[%s3860_s26 + $0x190] sm:$0xf] }
  0x97   : > { %569 = vst [vmem:[%s3865_s7 + $0xc0] sm:$0xf] %v568_v48  ;;  %571 = vst [vmem:[%s3865_s7 + $0xc4] sm:$0xf] %v570_v49  ;;  %v574_v51 = vld [vmem:[%s3860_s26 + $0x198] sm:$0xf] }
  0x98   : > { %573 = vst [vmem:[%s3865_s7 + $0xc8] sm:$0xf] %v572_v50  ;;  %v576_v52 = vld [vmem:[%s3860_s26 + $0x1a0] sm:$0xf]  ;;  %v578_v53 = vld [vmem:[%s3860_s26 + $0x1a8] sm:$0xf] }
  0x99   : > { %575 = vst [vmem:[%s3865_s7 + $0xcc] sm:$0xf] %v574_v51  ;;  %577 = vst [vmem:[%s3865_s7 + $0xd0] sm:$0xf] %v576_v52  ;;  %v580_v54 = vld [vmem:[%s3860_s26 + $0x1b0] sm:$0xf] }
  0x9a   : > { %579 = vst [vmem:[%s3865_s7 + $0xd4] sm:$0xf] %v578_v53  ;;  %v582_v55 = vld [vmem:[%s3860_s26 + $0x1b8] sm:$0xf]  ;;  %v584_v56 = vld [vmem:[%s3860_s26 + $0x1c0] sm:$0xf] }
  0x9b   : > { %581 = vst [vmem:[%s3865_s7 + $0xd8] sm:$0xf] %v580_v54  ;;  %583 = vst [vmem:[%s3865_s7 + $0xdc] sm:$0xf] %v582_v55  ;;  %v586_v57 = vld [vmem:[%s3860_s26 + $0x1c8] sm:$0xf] }
  0x9c   : > { %585 = vst [vmem:[%s3865_s7 + $0xe0] sm:$0xf] %v584_v56  ;;  %v588_v58 = vld [vmem:[%s3860_s26 + $0x1d0] sm:$0xf]  ;;  %v590_v59 = vld [vmem:[%s3860_s26 + $0x1d8] sm:$0xf] }
  0x9d   : > { %587 = vst [vmem:[%s3865_s7 + $0xe4] sm:$0xf] %v586_v57  ;;  %589 = vst [vmem:[%s3865_s7 + $0xe8] sm:$0xf] %v588_v58  ;;  %v592_v60 = vld [vmem:[%s3860_s26 + $0x1e0] sm:$0xf] }
  0x9e   : > { %591 = vst [vmem:[%s3865_s7 + $0xec] sm:$0xf] %v590_v59  ;;  %v594_v61 = vld [vmem:[%s3860_s26 + $0x1e8] sm:$0xf]  ;;  %v596_v62 = vld [vmem:[%s3860_s26 + $0x1f0] sm:$0xf] }
  0x9f   : > { %593 = vst [vmem:[%s3865_s7 + $0xf0] sm:$0xf] %v592_v60  ;;  %595 = vst [vmem:[%s3865_s7 + $0xf4] sm:$0xf] %v594_v61  ;;  %v598_v63 = vld [vmem:[%s3860_s26 + $0x1f8] sm:$0xf] }
  0xa0   : > { %597 = vst [vmem:[%s3865_s7 + $0xf8] sm:$0xf] %v596_v62  ;;  %599 = vst [vmem:[%s3865_s7 + $0xfc] sm:$0xf] %v598_v63 }
  0xa1 PF: > { %p2820_p3 = scmp.ge.s32.totalorder %s3447_s23, 1  ;;  %p756_p4 = scmp.lt.s32.totalorder %s3447_s23, 5 }
  0xa3   : > { %p757_p5 = pnand %p2820_p3, %p756_p4 }
  0xa4   : > { %s763_s0 = sand.u32 (!%p757_p5), 1, %s3423_s17   ;;  %s770_s8 = sand.u32 (!%p757_p5), 1, %s3415_s15  }
  0xa5   : > { %760 = sbr.rel (%p757_p5) target bundleno = 738 (0x2e2), region = 88  ;;  %s2821_s30 = sshll.u32 (!%p757_p5), %s763_s0, 10 }
  0xa6   : > { %s2822_s9 = sshll.u32 (!%p757_p5), %s770_s8, 8  ;;  %s797_s26 = sand.u32 (!%p757_p5), 1, %s3407_s13  }
  0xa7   : > { %p803_p6 = scmp.lt.s32.totalorder (!%p757_p5), %s3435_s20, 1  ;;  %s2823_s29 = sshll.u32 (!%p757_p5), %s797_s26, 9 }
  0xa8   : > { %s4004_s7 = scalar_lea.vmem (!%p757_p5), [#allocation2], %s2821_s30  ;;  %s4006_s1 = scalar_lea.vmem (!%p757_p5), [#allocation3], %s2822_s9 }
  0xa9   : > { %s4008_s22 = scalar_lea.vmem (!%p757_p5), [#allocation4], %s2823_s29  ;;  %p2824_p7 = scmp.ne.s32.totalorder (!%p757_p5), %s3431_s19, 0 }
  0xaa   : > { %s804_s24 = scalar_select %p803_p6, %s3435_s20, 1 }
  0xab   : > { %811 = sbr.rel (%p2824_p7) target bundleno = 209 (0xd1), region = 100 }
  0xac   : > { %s805_s6 = scalar_lea.vmem %s4537_s2, %s804_s24 }
  0xb0   : > { %v4011_v0 = vld [vmem:[%s805_s6] ss:$0 sm:$0xff] }
  0xb1   : > { %819 = vst [vmem:[%s4008_s22] sm:$0xff] %v4011_v0  ;;  %820 = vst [vmem:[%s4008_s22 + $0x8] sm:$0xff] %v4011_v0 }
  0xb2   : > { %821 = vst [vmem:[%s4008_s22 + $0x10] sm:$0xff] %v4011_v0  ;;  %822 = vst [vmem:[%s4008_s22 + $0x18] sm:$0xff] %v4011_v0 }
  0xb3   : > { %823 = vst [vmem:[%s4008_s22 + $0x20] sm:$0xff] %v4011_v0  ;;  %824 = vst [vmem:[%s4008_s22 + $0x28] sm:$0xff] %v4011_v0 }
  0xb4   : > { %825 = vst [vmem:[%s4008_s22 + $0x30] sm:$0xff] %v4011_v0  ;;  %826 = vst [vmem:[%s4008_s22 + $0x38] sm:$0xff] %v4011_v0 }
  0xb5   : > { %827 = vst [vmem:[%s4008_s22 + $0x40] sm:$0xff] %v4011_v0  ;;  %828 = vst [vmem:[%s4008_s22 + $0x48] sm:$0xff] %v4011_v0 }
  0xb6   : > { %829 = vst [vmem:[%s4008_s22 + $0x50] sm:$0xff] %v4011_v0  ;;  %830 = vst [vmem:[%s4008_s22 + $0x58] sm:$0xff] %v4011_v0 }
  0xb7   : > { %831 = vst [vmem:[%s4008_s22 + $0x60] sm:$0xff] %v4011_v0  ;;  %832 = vst [vmem:[%s4008_s22 + $0x68] sm:$0xff] %v4011_v0 }
  0xb8   : > { %833 = vst [vmem:[%s4008_s22 + $0x70] sm:$0xff] %v4011_v0  ;;  %834 = vst [vmem:[%s4008_s22 + $0x78] sm:$0xff] %v4011_v0 }
  0xb9   : > { %835 = vst [vmem:[%s4008_s22 + $0x80] sm:$0xff] %v4011_v0  ;;  %836 = vst [vmem:[%s4008_s22 + $0x88] sm:$0xff] %v4011_v0 }
  0xba   : > { %837 = vst [vmem:[%s4008_s22 + $0x90] sm:$0xff] %v4011_v0  ;;  %838 = vst [vmem:[%s4008_s22 + $0x98] sm:$0xff] %v4011_v0 }
  0xbb   : > { %839 = vst [vmem:[%s4008_s22 + $0xa0] sm:$0xff] %v4011_v0  ;;  %840 = vst [vmem:[%s4008_s22 + $0xa8] sm:$0xff] %v4011_v0 }
  0xbc   : > { %841 = vst [vmem:[%s4008_s22 + $0xb0] sm:$0xff] %v4011_v0  ;;  %842 = vst [vmem:[%s4008_s22 + $0xb8] sm:$0xff] %v4011_v0 }
  0xbd   : > { %843 = vst [vmem:[%s4008_s22 + $0xc0] sm:$0xff] %v4011_v0  ;;  %844 = vst [vmem:[%s4008_s22 + $0xc8] sm:$0xff] %v4011_v0 }
  0xbe   : > { %845 = vst [vmem:[%s4008_s22 + $0xd0] sm:$0xff] %v4011_v0  ;;  %846 = vst [vmem:[%s4008_s22 + $0xd8] sm:$0xff] %v4011_v0 }
  0xbf   : > { %847 = vst [vmem:[%s4008_s22 + $0xe0] sm:$0xff] %v4011_v0  ;;  %848 = vst [vmem:[%s4008_s22 + $0xe8] sm:$0xff] %v4011_v0 }
  0xc0   : > { %849 = vst [vmem:[%s4008_s22 + $0xf0] sm:$0xff] %v4011_v0  ;;  %850 = vst [vmem:[%s4008_s22 + $0xf8] sm:$0xff] %v4011_v0 }
  0xc1   : > { %851 = vst [vmem:[%s4008_s22 + $0x100] sm:$0xff] %v4011_v0  ;;  %852 = vst [vmem:[%s4008_s22 + $0x108] sm:$0xff] %v4011_v0 }
  0xc2   : > { %853 = vst [vmem:[%s4008_s22 + $0x110] sm:$0xff] %v4011_v0  ;;  %854 = vst [vmem:[%s4008_s22 + $0x118] sm:$0xff] %v4011_v0 }
  0xc3   : > { %855 = vst [vmem:[%s4008_s22 + $0x120] sm:$0xff] %v4011_v0  ;;  %856 = vst [vmem:[%s4008_s22 + $0x128] sm:$0xff] %v4011_v0 }
  0xc4   : > { %857 = vst [vmem:[%s4008_s22 + $0x130] sm:$0xff] %v4011_v0  ;;  %858 = vst [vmem:[%s4008_s22 + $0x138] sm:$0xff] %v4011_v0 }
  0xc5   : > { %859 = vst [vmem:[%s4008_s22 + $0x140] sm:$0xff] %v4011_v0  ;;  %860 = vst [vmem:[%s4008_s22 + $0x148] sm:$0xff] %v4011_v0 }
  0xc6   : > { %861 = vst [vmem:[%s4008_s22 + $0x150] sm:$0xff] %v4011_v0  ;;  %862 = vst [vmem:[%s4008_s22 + $0x158] sm:$0xff] %v4011_v0 }
  0xc7   : > { %863 = vst [vmem:[%s4008_s22 + $0x160] sm:$0xff] %v4011_v0  ;;  %864 = vst [vmem:[%s4008_s22 + $0x168] sm:$0xff] %v4011_v0 }
  0xc8   : > { %865 = vst [vmem:[%s4008_s22 + $0x170] sm:$0xff] %v4011_v0  ;;  %866 = vst [vmem:[%s4008_s22 + $0x178] sm:$0xff] %v4011_v0 }
  0xc9   : > { %867 = vst [vmem:[%s4008_s22 + $0x180] sm:$0xff] %v4011_v0  ;;  %868 = vst [vmem:[%s4008_s22 + $0x188] sm:$0xff] %v4011_v0 }
  0xca   : > { %869 = vst [vmem:[%s4008_s22 + $0x190] sm:$0xff] %v4011_v0  ;;  %870 = vst [vmem:[%s4008_s22 + $0x198] sm:$0xff] %v4011_v0 }
  0xcb   : > { %871 = vst [vmem:[%s4008_s22 + $0x1a0] sm:$0xff] %v4011_v0  ;;  %872 = vst [vmem:[%s4008_s22 + $0x1a8] sm:$0xff] %v4011_v0 }
  0xcc   : > { %873 = vst [vmem:[%s4008_s22 + $0x1b0] sm:$0xff] %v4011_v0  ;;  %874 = vst [vmem:[%s4008_s22 + $0x1b8] sm:$0xff] %v4011_v0 }
  0xcd   : > { %875 = vst [vmem:[%s4008_s22 + $0x1c0] sm:$0xff] %v4011_v0  ;;  %876 = vst [vmem:[%s4008_s22 + $0x1c8] sm:$0xff] %v4011_v0 }
  0xce   : > { %877 = vst [vmem:[%s4008_s22 + $0x1d0] sm:$0xff] %v4011_v0  ;;  %878 = vst [vmem:[%s4008_s22 + $0x1d8] sm:$0xff] %v4011_v0 }
  0xcf   : > { %879 = vst [vmem:[%s4008_s22 + $0x1e0] sm:$0xff] %v4011_v0  ;;  %880 = vst [vmem:[%s4008_s22 + $0x1e8] sm:$0xff] %v4011_v0 }
  0xd0   : > { %881 = vst [vmem:[%s4008_s22 + $0x1f0] sm:$0xff] %v4011_v0  ;;  %882 = vst [vmem:[%s4008_s22 + $0x1f8] sm:$0xff] %v4011_v0 }
  0xd1 PF: > { %v3099_v1 = vld [vmem:[%s4006_s1 + $0x38] sm:$0xff]   ;;  %v3449_v2 = vmov 0   ;;  %v3101_v4 = vld [vmem:[%s4006_s1 + $0x30] sm:$0xff]   ;;  %v3103_v6 = vld [vmem:[%s4006_s1 + $0x28] sm:$0xff]   ;;  %s2693_s15 = sshll.u32 %s4008_s22, 4  ;;  %s3450_s30 = smov [#allocation4]   ;;  %s4467_s15 = int_to_ptr.vmem [resolvable:$true] %s2693_s15 }
  0xd2   : > { %1971 = vmatprep.subr.bf16.mxu0 %v3449_v2  ;;  %2260 = vmatprep.subr.bf16.mxu1 %v3449_v2  ;;  %v3100_v3 = vld [vmem:[%s4006_s1 + $0xb8] sm:$0xff]   ;;  %v3102_v5 = vld [vmem:[%s4006_s1 + $0xb0] sm:$0xff]   ;;  %v3104_v7 = vld [vmem:[%s4006_s1 + $0xa8] sm:$0xff]   ;;  %s3323_s8 = scalar_lea.vmem %s4467_s15, 8192  ;;  %s3327_s9 = sshll.u32 %s3450_s30, 4  ;;  %s3328_s9 = int_to_ptr.vmem [resolvable:$false] %s3327_s9 }
  0xd3   : > { %1972 = vmatpush1.bf16.msra.mxu0 %v3099_v1  ;;  %2261 = vmatpush1.bf16.msra.mxu1 %v3100_v3  ;;  %v3105_v8 = vld [vmem:[%s4006_s1 + $0x20] sm:$0xff]   ;;  %v3107_v10 = vld [vmem:[%s4006_s1 + $0x18] sm:$0xff]   ;;  %v3109_v12 = vld [vmem:[%s4006_s1 + $0x10] sm:$0xff]   ;;  %p3324_p8 = scmp.ne.s32.totalorder %s4467_s15, %s3323_s8  ;;  %s3329_s29 = scalar_lea.vmem %s3328_s9, 16384 }
  0xd4   : > { %1973 = vmatprep.subr.bf16.mxu0 %v3449_v2  ;;  %2262 = vmatprep.subr.bf16.mxu1 %v3449_v2  ;;  %v3106_v9 = vld [vmem:[%s4006_s1 + $0xa0] sm:$0xff]   ;;  %v3108_v11 = vld [vmem:[%s4006_s1 + $0x98] sm:$0xff]   ;;  %v3110_v13 = vld [vmem:[%s4006_s1 + $0x90] sm:$0xff]   ;;  %p3330_p11 = scmp.lt.s32.totalorder %s4467_s15, %s3328_s9  ;;  %p3331_p12 = scmp.lt.s32.totalorder %s3329_s29, %s3323_s8 }
  0xd5   : > { %v3111_v14 = vld [vmem:[%s4006_s1 + $0x8] sm:$0xff]   ;;  %v3113_v16 = vld [vmem:[%s4006_s1] sm:$0xff]   ;;  %v3115_v18 = vld [vmem:[%s4006_s1 + $0x78] sm:$0xff]   ;;  %p3325_p9 = pnand %p3324_p8, %p3576_p0 }
  0xd6   : > { %v3112_v15 = vld [vmem:[%s4006_s1 + $0x88] sm:$0xff]   ;;  %v3114_v17 = vld [vmem:[%s4006_s1 + $0x80] sm:$0xff]   ;;  %v3116_v19 = vld [vmem:[%s4006_s1 + $0xf8] sm:$0xff]   ;;  %p3332_p13 = por %p3331_p12, %p3330_p11 }
  0xd7   : > { %1974 = vmatpush1.bf16.msra.mxu0 %v3101_v4  ;;  %2263 = vmatpush1.bf16.msra.mxu1 %v3102_v5  ;;  %v3133_v20 = vld [vmem:[%s4004_s7 + $0x4] ss:$16 sps:$4 sm:$0xff]   ;;  %v3136_v22 = vld [vmem:[%s4004_s7 + $0xc] ss:$16 sps:$4 sm:$0xff]   ;;  %v3131_v36 = vld [vmem:[%s4004_s7] ss:$16 sps:$4 sm:$0xff]   ;;  %p3326_p10 = pneg %p3325_p9 }
  0xd8   : > { %1975 = vmatprep.subr.bf16.mxu0 %v3449_v2  ;;  %2264 = vmatprep.subr.bf16.mxu1 %v3449_v2  ;;  %v3117_v21 = vld [vmem:[%s4006_s1 + $0x70] sm:$0xff]   ;;  %v3119_v24 = vld [vmem:[%s4006_s1 + $0x68] sm:$0xff]   ;;  %v3121_v26 = vld [vmem:[%s4006_s1 + $0x60] sm:$0xff]  }
  0xd9   : > { %v3118_v23 = vld [vmem:[%s4006_s1 + $0xf0] sm:$0xff]   ;;  %2003 = vmatprep.mubr.bf16.mxu0 %v3133_v20  ;;  %2292 = vmatprep.mubr.bf16.mxu1 %v3136_v22  ;;  %v3120_v25 = vld [vmem:[%s4006_s1 + $0xe8] sm:$0xff]   ;;  %v3122_v27 = vld [vmem:[%s4006_s1 + $0xe0] sm:$0xff]   ;;  %p3333_p2 = pnand %p3332_p13, %p3326_p10 }
  0xda   : > { %v3123_v28 = vld [vmem:[%s4006_s1 + $0x58] sm:$0xff]   ;;  %v3125_v30 = vld [vmem:[%s4006_s1 + $0x50] sm:$0xff]   ;;  %v3127_v32 = vld [vmem:[%s4006_s1 + $0x48] sm:$0xff]  }
  0xdb   : > { %1976 = vmatpush1.bf16.msra.mxu0 %v3103_v6  ;;  %2265 = vmatpush1.bf16.msra.mxu1 %v3104_v7  ;;  %v3124_v29 = vld [vmem:[%s4006_s1 + $0xd8] sm:$0xff]   ;;  %v3126_v31 = vld [vmem:[%s4006_s1 + $0xd0] sm:$0xff]   ;;  %v3128_v33 = vld [vmem:[%s4006_s1 + $0xc8] sm:$0xff]  }
  0xdc   : > { %1977 = vmatprep.subr.bf16.mxu0 %v3449_v2  ;;  %2266 = vmatprep.subr.bf16.mxu1 %v3449_v2  ;;  %v3129_v34 = vld [vmem:[%s4006_s1 + $0x40] sm:$0xff]   ;;  %v3134_v37 = vld [vmem:[%s4004_s7 + $0x8] ss:$16 sps:$4 sm:$0xff]   ;;  %v3139_v39 = vld [vmem:[%s4004_s7 + $0x2c] ss:$16 sps:$4 sm:$0xff]  }
  0xdd   : > { %v3130_v35 = vld [vmem:[%s4006_s1 + $0xc0] sm:$0xff]   ;;  %v3142_v41 = vld [vmem:[%s4004_s7 + $0x28] ss:$16 sps:$4 sm:$0xff]   ;;  %v3145_v43 = vld [vmem:[%s4004_s7 + $0x4c] ss:$16 sps:$4 sm:$0xff]   ;;  %s2987_s1 = sshll.u32 %s3435_s20, 7 }
  0xde   : > { %v3137_v38 = vld [vmem:[%s4004_s7 + $0x24] ss:$16 sps:$4 sm:$0xff]   ;;  %v3141_v40 = vld [vmem:[%s4004_s7 + $0x20] ss:$16 sps:$4 sm:$0xff]   ;;  %v3148_v45 = vld [vmem:[%s4004_s7 + $0x48] ss:$16 sps:$4 sm:$0xff]   ;;  %s4465_s0 = scalar_lea.hbm %s4538_s3, %s2987_s1 }
  0xdf   : > { %1978 = vmatpush1.bf16.msra.mxu0 %v3105_v8  ;;  %2267 = vmatpush1.bf16.msra.mxu1 %v3106_v9  ;;  %v3143_v42 = vld [vmem:[%s4004_s7 + $0x44] ss:$16 sps:$4 sm:$0xff]   ;;  %v3147_v44 = vld [vmem:[%s4004_s7 + $0x40] ss:$16 sps:$4 sm:$0xff]   ;;  %v3151_v47 = vld [vmem:[%s4004_s7 + $0x6c] ss:$16 sps:$4 sm:$0xff]  }
  0xe0   : > { %1979 = vmatprep.subr.bf16.mxu0 %v3449_v2  ;;  %2268 = vmatprep.subr.bf16.mxu1 %v3449_v2  ;;  %v3149_v46 = vld [vmem:[%s4004_s7 + $0x64] ss:$16 sps:$4 sm:$0xff]   ;;  %v3153_v48 = vld [vmem:[%s4004_s7 + $0x60] ss:$16 sps:$4 sm:$0xff]   ;;  %v3154_v49 = vld [vmem:[%s4004_s7 + $0x68] ss:$16 sps:$4 sm:$0xff]  }
  0xe1   : > { %v3155_v50 = vld [vmem:[%s4004_s7 + $0x84] ss:$16 sps:$4 sm:$0xff]   ;;  %v3157_v51 = vld [vmem:[%s4004_s7 + $0x8c] ss:$16 sps:$4 sm:$0xff]   ;;  %v3159_v52 = vld [vmem:[%s4004_s7 + $0x80] ss:$16 sps:$4 sm:$0xff]  }
  0xe2   : > { %v3160_v53 = vld [vmem:[%s4004_s7 + $0x88] ss:$16 sps:$4 sm:$0xff]   ;;  %v3161_v54 = vld [vmem:[%s4004_s7 + $0xa4] ss:$16 sps:$4 sm:$0xff]   ;;  %v3163_v55 = vld [vmem:[%s4004_s7 + $0xac] ss:$16 sps:$4 sm:$0xff]  }
  0xe3   : > { %1980 = vmatpush1.bf16.msra.mxu0 %v3107_v10  ;;  %2269 = vmatpush1.bf16.msra.mxu1 %v3108_v11  ;;  %v3165_v56 = vld [vmem:[%s4004_s7 + $0xa0] ss:$16 sps:$4 sm:$0xff]   ;;  %v3166_v57 = vld [vmem:[%s4004_s7 + $0xa8] ss:$16 sps:$4 sm:$0xff]   ;;  %v3167_v58 = vld [vmem:[%s4004_s7 + $0xc4] ss:$16 sps:$4 sm:$0xff]  }
  0xe4   : > { %1981 = vmatprep.subr.bf16.mxu0 %v3449_v2  ;;  %2270 = vmatprep.subr.bf16.mxu1 %v3449_v2  ;;  %v3169_v59 = vld [vmem:[%s4004_s7 + $0xcc] ss:$16 sps:$4 sm:$0xff]   ;;  %v3171_v60 = vld [vmem:[%s4004_s7 + $0xc0] ss:$16 sps:$4 sm:$0xff]   ;;  %v3172_v61 = vld [vmem:[%s4004_s7 + $0xc8] ss:$16 sps:$4 sm:$0xff]  }
  0xe5   : > { %v3173_v62 = vld [vmem:[%s4004_s7 + $0xe4] ss:$16 sps:$4 sm:$0xff]   ;;  %v3175_v63 = vld [vmem:[%s4004_s7 + $0xec] ss:$16 sps:$4 sm:$0xff]   ;;  %v3177_v0 = vld [vmem:[%s4004_s7 + $0xe0] ss:$16 sps:$4 sm:$0xff]  }
  0xe6   : > { %v3178_v1 = vld [vmem:[%s4004_s7 + $0xe8] ss:$16 sps:$4 sm:$0xff]   ;;  %v3181_v3 = vld [vmem:[%s4004_s7 + $0x10c] ss:$16 sps:$4 sm:$0xff]   ;;  %v3183_v4 = vld [vmem:[%s4004_s7 + $0x100] ss:$16 sps:$4 sm:$0xff]  }
  0xe7   : > { %1982 = vmatpush1.bf16.msra.mxu0 %v3109_v12  ;;  %2271 = vmatpush1.bf16.msra.mxu1 %v3110_v13  ;;  %v3184_v5 = vld [vmem:[%s4004_s7 + $0x108] ss:$16 sps:$4 sm:$0xff]   ;;  %v3185_v6 = vld [vmem:[%s4004_s7 + $0x124] ss:$16 sps:$4 sm:$0xff]   ;;  %v3187_v7 = vld [vmem:[%s4004_s7 + $0x12c] ss:$16 sps:$4 sm:$0xff]  }
  0xe8   : > { %1983 = vmatprep.subr.bf16.mxu0 %v3449_v2  ;;  %2272 = vmatprep.subr.bf16.mxu1 %v3449_v2  ;;  %v3189_v8 = vld [vmem:[%s4004_s7 + $0x120] ss:$16 sps:$4 sm:$0xff]   ;;  %v3190_v9 = vld [vmem:[%s4004_s7 + $0x128] ss:$16 sps:$4 sm:$0xff]   ;;  %v3191_v10 = vld [vmem:[%s4004_s7 + $0x144] ss:$16 sps:$4 sm:$0xff]  }
  0xe9   : > { %v3193_v11 = vld [vmem:[%s4004_s7 + $0x14c] ss:$16 sps:$4 sm:$0xff]   ;;  %v3195_v12 = vld [vmem:[%s4004_s7 + $0x140] ss:$16 sps:$4 sm:$0xff]   ;;  %v3196_v13 = vld [vmem:[%s4004_s7 + $0x148] ss:$16 sps:$4 sm:$0xff]  }
  0xea   : > { %v3207_v20 = vld [vmem:[%s4004_s7 + $0x180] ss:$16 sps:$4 sm:$0xff]   ;;  %v3209_v22 = vld [vmem:[%s4004_s7 + $0x1a4] ss:$16 sps:$4 sm:$0xff]   ;;  %s4472_s20 = scalar_lea.sflag [#allocation5], %s797_s26 }
  0xeb   : > { %1984 = vmatpush1.bf16.msra.mxu0 %v3111_v14  ;;  %2273 = vmatpush1.bf16.msra.mxu1 %v3112_v15  ;;  %v3197_v14 = vld [vmem:[%s4004_s7 + $0x164] ss:$16 sps:$4 sm:$0xff]   ;;  %v3199_v15 = vld [vmem:[%s4004_s7 + $0x16c] ss:$16 sps:$4 sm:$0xff]  }
  0xec   : > { %1985 = vmatprep.subr.bf16.mxu0 %v3449_v2  ;;  %2274 = vmatprep.subr.bf16.mxu1 %v3449_v2 }
  0xef   : > { %1986 = vmatpush1.bf16.msra.mxu0 %v3113_v16  ;;  %2275 = vmatpush1.bf16.msra.mxu1 %v3114_v17  ;;  %v3201_v16 = vld [vmem:[%s4004_s7 + $0x160] ss:$16 sps:$4 sm:$0xff]   ;;  %v3202_v17 = vld [vmem:[%s4004_s7 + $0x168] ss:$16 sps:$4 sm:$0xff]  }
  0xf0   : > { %1987 = vmatprep.subr.bf16.mxu0 %v3449_v2  ;;  %2276 = vmatprep.subr.bf16.mxu1 %v3449_v2 }
  0xf3   : > { %1988 = vmatpush2.bf16.msra.mxu0 %v3115_v18  ;;  %2277 = vmatpush2.bf16.msra.mxu1 %v3116_v19  ;;  %v3203_v18 = vld [vmem:[%s4004_s7 + $0x184] ss:$16 sps:$4 sm:$0xff]   ;;  %v3205_v19 = vld [vmem:[%s4004_s7 + $0x18c] ss:$16 sps:$4 sm:$0xff]  }
  0xf4   : > { %1989 = vmatprep.subr.bf16.mxu0 %v3449_v2  ;;  %2278 = vmatprep.subr.bf16.mxu1 %v3449_v2 }
  0xf7   : > { %1990 = vmatpush2.bf16.msra.mxu0 %v3117_v21  ;;  %2279 = vmatpush2.bf16.msra.mxu1 %v3118_v23  ;;  %v3208_v21 = vld [vmem:[%s4004_s7 + $0x188] ss:$16 sps:$4 sm:$0xff]   ;;  %v3211_v23 = vld [vmem:[%s4004_s7 + $0x1ac] ss:$16 sps:$4 sm:$0xff]  }
  0xf8   : > { %1991 = vmatprep.subr.bf16.mxu0 %v3449_v2  ;;  %2280 = vmatprep.subr.bf16.mxu1 %v3449_v2 }
  0xfb   : > { %1992 = vmatpush2.bf16.msra.mxu0 %v3119_v24  ;;  %2281 = vmatpush2.bf16.msra.mxu1 %v3120_v25  ;;  %v3213_v24 = vld [vmem:[%s4004_s7 + $0x1a0] ss:$16 sps:$4 sm:$0xff]   ;;  %v3214_v25 = vld [vmem:[%s4004_s7 + $0x1a8] ss:$16 sps:$4 sm:$0xff]  }
  0xfc   : > { %1993 = vmatprep.subr.bf16.mxu0 %v3449_v2  ;;  %2282 = vmatprep.subr.bf16.mxu1 %v3449_v2 }
  0xff   : > { %1994 = vmatpush2.bf16.msra.mxu0 %v3121_v26  ;;  %2283 = vmatpush2.bf16.msra.mxu1 %v3122_v27  ;;  %v3215_v26 = vld [vmem:[%s4004_s7 + $0x1c4] ss:$16 sps:$4 sm:$0xff]   ;;  %v3217_v27 = vld [vmem:[%s4004_s7 + $0x1cc] ss:$16 sps:$4 sm:$0xff]  }
 0x100   : > { %1995 = vmatprep.subr.bf16.mxu0 %v3449_v2  ;;  %2284 = vmatprep.subr.bf16.mxu1 %v3449_v2 }
 0x103   : > { %1996 = vmatpush2.bf16.msra.mxu0 %v3123_v28  ;;  %2285 = vmatpush2.bf16.msra.mxu1 %v3124_v29  ;;  %v3219_v28 = vld [vmem:[%s4004_s7 + $0x1c0] ss:$16 sps:$4 sm:$0xff]   ;;  %v3220_v29 = vld [vmem:[%s4004_s7 + $0x1c8] ss:$16 sps:$4 sm:$0xff]  }
 0x104   : > { %1997 = vmatprep.subr.bf16.mxu0 %v3449_v2  ;;  %2286 = vmatprep.subr.bf16.mxu1 %v3449_v2 }
 0x107   : > { %1998 = vmatpush2.bf16.msra.mxu0 %v3125_v30  ;;  %2287 = vmatpush2.bf16.msra.mxu1 %v3126_v31  ;;  %v3221_v30 = vld [vmem:[%s4004_s7 + $0x1e4] ss:$16 sps:$4 sm:$0xff]   ;;  %v3223_v31 = vld [vmem:[%s4004_s7 + $0x1ec] ss:$16 sps:$4 sm:$0xff]  }
 0x108   : > { %1999 = vmatprep.subr.bf16.mxu0 %v3449_v2  ;;  %2288 = vmatprep.subr.bf16.mxu1 %v3449_v2 }
 0x10b   : > { %2000 = vmatpush2.bf16.msra.mxu0 %v3127_v32  ;;  %2289 = vmatpush2.bf16.msra.mxu1 %v3128_v33  ;;  %v3225_v32 = vld [vmem:[%s4004_s7 + $0x1e0] ss:$16 sps:$4 sm:$0xff]   ;;  %v3226_v33 = vld [vmem:[%s4004_s7 + $0x1e8] ss:$16 sps:$4 sm:$0xff]  }
 0x10c   : > { %2001 = vmatprep.subr.bf16.mxu0 %v3449_v2  ;;  %2290 = vmatprep.subr.bf16.mxu1 %v3449_v2  ;;  %v3179_v2 = vld [vmem:[%s4004_s7 + $0x104] ss:$16 sps:$4 sm:$0xff]  }
 0x10f   : > { %2002 = vmatpush2.bf16.msra.mxu0 %v3129_v34  ;;  %2291 = vmatpush2.bf16.msra.mxu1 %v3130_v35  ;;  %v3227_v34 = vld [vmem:[%s4004_s7 + $0x204] ss:$16 sps:$4 sm:$0xff]   ;;  %v3229_v35 = vld [vmem:[%s4004_s7 + $0x20c] ss:$16 sps:$4 sm:$0xff]  }
 0x112   : > { %2004 = vmatmul.mubr.bf16.vlgmr.msra.gmra.mxu0 %v3131_v36  ;;  %2293 = vmatmul.mubr.bf16.vlgmr.msra.gmra.mxu1 %v3134_v37  ;;  %v3231_v36 = vld [vmem:[%s4004_s7 + $0x200] ss:$16 sps:$4 sm:$0xff]   ;;  %v3232_v37 = vld [vmem:[%s4004_s7 + $0x208] ss:$16 sps:$4 sm:$0xff]  }
 0x113   : > { %2011 = vmatprep.mubr.bf16.mxu0 %v3137_v38  ;;  %2300 = vmatprep.mubr.bf16.mxu1 %v3139_v39  ;;  %v3233_v38 = vld [vmem:[%s4004_s7 + $0x224] ss:$16 sps:$4 sm:$0xff]   ;;  %v3235_v39 = vld [vmem:[%s4004_s7 + $0x22c] ss:$16 sps:$4 sm:$0xff]  }
 0x11a   : > { %2012 = vmatmul.mubr.bf16.gmra.mxu0 %v3141_v40  ;;  %2301 = vmatmul.mubr.bf16.gmra.mxu1 %v3142_v41  ;;  %v3237_v40 = vld [vmem:[%s4004_s7 + $0x220] ss:$16 sps:$4 sm:$0xff]   ;;  %v3238_v41 = vld [vmem:[%s4004_s7 + $0x228] ss:$16 sps:$4 sm:$0xff]  }
 0x11b   : > { %2019 = vmatprep.mubr.bf16.mxu0 %v3143_v42  ;;  %2308 = vmatprep.mubr.bf16.mxu1 %v3145_v43  ;;  %v3239_v42 = vld [vmem:[%s4004_s7 + $0x244] ss:$16 sps:$4 sm:$0xff]   ;;  %v3241_v43 = vld [vmem:[%s4004_s7 + $0x24c] ss:$16 sps:$4 sm:$0xff]  }
 0x122   : > { %2020 = vmatmul.mubr.bf16.gmra.mxu0 %v3147_v44  ;;  %2309 = vmatmul.mubr.bf16.gmra.mxu1 %v3148_v45  ;;  %v3243_v44 = vld [vmem:[%s4004_s7 + $0x240] ss:$16 sps:$4 sm:$0xff]   ;;  %v3244_v45 = vld [vmem:[%s4004_s7 + $0x248] ss:$16 sps:$4 sm:$0xff]  }
 0x123   : > { %2027 = vmatprep.mubr.bf16.mxu0 %v3149_v46  ;;  %2316 = vmatprep.mubr.bf16.mxu1 %v3151_v47  ;;  %v3245_v46 = vld [vmem:[%s4004_s7 + $0x264] ss:$16 sps:$4 sm:$0xff]   ;;  %v3247_v47 = vld [vmem:[%s4004_s7 + $0x26c] ss:$16 sps:$4 sm:$0xff]  }
 0x12a   : > { %2028 = vmatmul.mubr.bf16.gmra.mxu0 %v3153_v48  ;;  %2317 = vmatmul.mubr.bf16.gmra.mxu1 %v3154_v49  ;;  %v3249_v48 = vld [vmem:[%s4004_s7 + $0x260] ss:$16 sps:$4 sm:$0xff]   ;;  %v3250_v49 = vld [vmem:[%s4004_s7 + $0x268] ss:$16 sps:$4 sm:$0xff]  }
 0x12b   : > { %2035 = vmatprep.mubr.bf16.mxu0 %v3155_v50  ;;  %2324 = vmatprep.mubr.bf16.mxu1 %v3157_v51  ;;  %v3251_v50 = vld [vmem:[%s4004_s7 + $0x284] ss:$16 sps:$4 sm:$0xff]   ;;  %v3253_v51 = vld [vmem:[%s4004_s7 + $0x28c] ss:$16 sps:$4 sm:$0xff]  }
 0x132   : > { %2036 = vmatmul.mubr.bf16.gmra.mxu0 %v3159_v52  ;;  %2325 = vmatmul.mubr.bf16.gmra.mxu1 %v3160_v53  ;;  %v3255_v52 = vld [vmem:[%s4004_s7 + $0x280] ss:$16 sps:$4 sm:$0xff]   ;;  %v3256_v53 = vld [vmem:[%s4004_s7 + $0x288] ss:$16 sps:$4 sm:$0xff]  }
 0x133   : > { %2043 = vmatprep.mubr.bf16.mxu0 %v3161_v54  ;;  %2332 = vmatprep.mubr.bf16.mxu1 %v3163_v55  ;;  %v3257_v54 = vld [vmem:[%s4004_s7 + $0x2a4] ss:$16 sps:$4 sm:$0xff]   ;;  %v3259_v55 = vld [vmem:[%s4004_s7 + $0x2ac] ss:$16 sps:$4 sm:$0xff]  }
 0x13a   : > { %2044 = vmatmul.mubr.bf16.gmra.mxu0 %v3165_v56  ;;  %2333 = vmatmul.mubr.bf16.gmra.mxu1 %v3166_v57  ;;  %v3261_v56 = vld [vmem:[%s4004_s7 + $0x2a0] ss:$16 sps:$4 sm:$0xff]   ;;  %v3262_v57 = vld [vmem:[%s4004_s7 + $0x2a8] ss:$16 sps:$4 sm:$0xff]  }
 0x13b   : > { %2051 = vmatprep.mubr.bf16.mxu0 %v3167_v58  ;;  %2340 = vmatprep.mubr.bf16.mxu1 %v3169_v59  ;;  %v3263_v58 = vld [vmem:[%s4004_s7 + $0x2c4] ss:$16 sps:$4 sm:$0xff]   ;;  %v3265_v59 = vld [vmem:[%s4004_s7 + $0x2cc] ss:$16 sps:$4 sm:$0xff]  }
 0x142   : > { %2052 = vmatmul.mubr.bf16.gmra.mxu0 %v3171_v60  ;;  %2341 = vmatmul.mubr.bf16.gmra.mxu1 %v3172_v61  ;;  %v3267_v60 = vld [vmem:[%s4004_s7 + $0x2c0] ss:$16 sps:$4 sm:$0xff]   ;;  %v3268_v61 = vld [vmem:[%s4004_s7 + $0x2c8] ss:$16 sps:$4 sm:$0xff]  }
 0x143   : > { %2059 = vmatprep.mubr.bf16.mxu0 %v3173_v62  ;;  %2348 = vmatprep.mubr.bf16.mxu1 %v3175_v63  ;;  %v3269_v62 = vld [vmem:[%s4004_s7 + $0x2e4] ss:$16 sps:$4 sm:$0xff]   ;;  %v3271_v63 = vld [vmem:[%s4004_s7 + $0x2ec] ss:$16 sps:$4 sm:$0xff]  }
 0x14a   : > { %2060 = vmatmul.mubr.bf16.gmra.mxu0 %v3177_v0  ;;  %2349 = vmatmul.mubr.bf16.gmra.mxu1 %v3178_v1  ;;  %v3273_v0 = vld [vmem:[%s4004_s7 + $0x2e0] ss:$16 sps:$4 sm:$0xff]   ;;  %v3274_v1 = vld [vmem:[%s4004_s7 + $0x2e8] ss:$16 sps:$4 sm:$0xff]  }
 0x14b   : > { %2067 = vmatprep.mubr.bf16.mxu0 %v3179_v2  ;;  %2356 = vmatprep.mubr.bf16.mxu1 %v3181_v3  ;;  %v3275_v2 = vld [vmem:[%s4004_s7 + $0x304] ss:$16 sps:$4 sm:$0xff]   ;;  %v3277_v3 = vld [vmem:[%s4004_s7 + $0x30c] ss:$16 sps:$4 sm:$0xff]  }
 0x152   : > { %2068 = vmatmul.mubr.bf16.gmra.mxu0 %v3183_v4  ;;  %2357 = vmatmul.mubr.bf16.gmra.mxu1 %v3184_v5  ;;  %v3279_v4 = vld [vmem:[%s4004_s7 + $0x300] ss:$16 sps:$4 sm:$0xff]   ;;  %v3280_v5 = vld [vmem:[%s4004_s7 + $0x308] ss:$16 sps:$4 sm:$0xff]  }
 0x153   : > { %2075 = vmatprep.mubr.bf16.mxu0 %v3185_v6  ;;  %2364 = vmatprep.mubr.bf16.mxu1 %v3187_v7  ;;  %v3281_v6 = vld [vmem:[%s4004_s7 + $0x324] ss:$16 sps:$4 sm:$0xff]   ;;  %v3283_v7 = vld [vmem:[%s4004_s7 + $0x32c] ss:$16 sps:$4 sm:$0xff]  }
 0x15a   : > { %2076 = vmatmul.mubr.bf16.gmra.mxu0 %v3189_v8  ;;  %2365 = vmatmul.mubr.bf16.gmra.mxu1 %v3190_v9  ;;  %v883_v9 = vld [vmem:[%s4008_s22] sm:$0xff] }
 0x15b   : > { %2083 = vmatprep.mubr.bf16.mxu0 %v3191_v10  ;;  %2372 = vmatprep.mubr.bf16.mxu1 %v3193_v11 }
 0x162   : > { %2084 = vmatmul.mubr.bf16.gmra.mxu0 %v3195_v12  ;;  %2373 = vmatmul.mubr.bf16.gmra.mxu1 %v3196_v13 }
 0x163   : > { %2091 = vmatprep.mubr.bf16.mxu0 %v3197_v14  ;;  %2380 = vmatprep.mubr.bf16.mxu1 %v3199_v15 }
 0x16a   : > { %2092 = vmatmul.mubr.bf16.gmra.mxu0 %v3201_v16  ;;  %2381 = vmatmul.mubr.bf16.gmra.mxu1 %v3202_v17  ;;  %v3285_v16 = vld [vmem:[%s4004_s7 + $0x320] ss:$16 sps:$4 sm:$0xff]   ;;  %v884_v17 = vld [vmem:[%s4008_s22 + $0x8] sm:$0xff] }
 0x16b   : > { %2099 = vmatprep.mubr.bf16.mxu0 %v3203_v18  ;;  %2388 = vmatprep.mubr.bf16.mxu1 %v3205_v19  ;;  %v3286_v19 = vld [vmem:[%s4004_s7 + $0x328] ss:$16 sps:$4 sm:$0xff]  }
 0x172   : > { %2100 = vmatmul.mubr.bf16.gmra.mxu0 %v3207_v20  ;;  %2389 = vmatmul.mubr.bf16.gmra.mxu1 %v3208_v21  ;;  %v3287_v20 = vld [vmem:[%s4004_s7 + $0x344] ss:$16 sps:$4 sm:$0xff]  }
 0x173   : > { %2107 = vmatprep.mubr.bf16.mxu0 %v3209_v22  ;;  %2396 = vmatprep.mubr.bf16.mxu1 %v3211_v23  ;;  %v3289_v23 = vld [vmem:[%s4004_s7 + $0x34c] ss:$16 sps:$4 sm:$0xff]  }
 0x17a   : > { %2108 = vmatmul.mubr.bf16.gmra.mxu0 %v3213_v24  ;;  %2397 = vmatmul.mubr.bf16.gmra.mxu1 %v3214_v25 }
 0x17b   : > { %2115 = vmatprep.mubr.bf16.mxu0 %v3215_v26  ;;  %2404 = vmatprep.mubr.bf16.mxu1 %v3217_v27  ;;  %v885_v27 = vld [vmem:[%s4008_s22 + $0x10] sm:$0xff] }
 0x182   : > { %2116 = vmatmul.mubr.bf16.gmra.mxu0 %v3219_v28  ;;  %2405 = vmatmul.mubr.bf16.gmra.mxu1 %v3220_v29 }
 0x183   : > { %2123 = vmatprep.mubr.bf16.mxu0 %v3221_v30  ;;  %2412 = vmatprep.mubr.bf16.mxu1 %v3223_v31 }
 0x18a   : > { %2124 = vmatmul.mubr.bf16.gmra.mxu0 %v3225_v32  ;;  %2413 = vmatmul.mubr.bf16.gmra.mxu1 %v3226_v33 }
 0x18b   : > { %2131 = vmatprep.mubr.bf16.mxu0 %v3227_v34  ;;  %2420 = vmatprep.mubr.bf16.mxu1 %v3229_v35  ;;  %v3291_v34 = vld [vmem:[%s4004_s7 + $0x340] ss:$16 sps:$4 sm:$0xff]   ;;  %v886_v35 = vld [vmem:[%s4008_s22 + $0x18] sm:$0xff] }
 0x192   : > { %2132 = vmatmul.mubr.bf16.gmra.mxu0 %v3231_v36  ;;  %2421 = vmatmul.mubr.bf16.gmra.mxu1 %v3232_v37  ;;  %v3292_v37 = vld [vmem:[%s4004_s7 + $0x348] ss:$16 sps:$4 sm:$0xff]  }
 0x193   : > { %2139 = vmatprep.mubr.bf16.mxu0 %v3233_v38  ;;  %2428 = vmatprep.mubr.bf16.mxu1 %v3235_v39  ;;  %v3293_v38 = vld [vmem:[%s4004_s7 + $0x364] ss:$16 sps:$4 sm:$0xff]  }
 0x19a   : > { %2140 = vmatmul.mubr.bf16.gmra.mxu0 %v3237_v40  ;;  %2429 = vmatmul.mubr.bf16.gmra.mxu1 %v3238_v41  ;;  %v3295_v41 = vld [vmem:[%s4004_s7 + $0x36c] ss:$16 sps:$4 sm:$0xff]  }
 0x19b   : > { %2147 = vmatprep.mubr.bf16.mxu0 %v3239_v42  ;;  %2436 = vmatprep.mubr.bf16.mxu1 %v3241_v43 }
 0x1a2   : > { %2148 = vmatmul.mubr.bf16.gmra.mxu0 %v3243_v44  ;;  %2437 = vmatmul.mubr.bf16.gmra.mxu1 %v3244_v45  ;;  %v887_v45 = vld [vmem:[%s4008_s22 + $0x20] sm:$0xff] }
 0x1a3   : > { %2155 = vmatprep.mubr.bf16.mxu0 %v3245_v46  ;;  %2444 = vmatprep.mubr.bf16.mxu1 %v3247_v47 }
 0x1aa   : > { %2156 = vmatmul.mubr.bf16.gmra.mxu0 %v3249_v48  ;;  %2445 = vmatmul.mubr.bf16.gmra.mxu1 %v3250_v49 }
 0x1ab   : > { %2163 = vmatprep.mubr.bf16.mxu0 %v3251_v50  ;;  %2452 = vmatprep.mubr.bf16.mxu1 %v3253_v51 }
 0x1b2   : > { %2164 = vmatmul.mubr.bf16.gmra.mxu0 %v3255_v52  ;;  %2453 = vmatmul.mubr.bf16.gmra.mxu1 %v3256_v53  ;;  %v3297_v52 = vld [vmem:[%s4004_s7 + $0x360] ss:$16 sps:$4 sm:$0xff]   ;;  %v888_v53 = vld [vmem:[%s4008_s22 + $0x28] sm:$0xff] }
 0x1b3   : > { %2171 = vmatprep.mubr.bf16.mxu0 %v3257_v54  ;;  %2460 = vmatprep.mubr.bf16.mxu1 %v3259_v55  ;;  %v3298_v55 = vld [vmem:[%s4004_s7 + $0x368] ss:$16 sps:$4 sm:$0xff]  }
 0x1ba   : > { %2172 = vmatmul.mubr.bf16.gmra.mxu0 %v3261_v56  ;;  %2461 = vmatmul.mubr.bf16.gmra.mxu1 %v3262_v57  ;;  %v3301_v56 = vld [vmem:[%s4004_s7 + $0x384] ss:$16 sps:$4 sm:$0xff]  }
 0x1bb   : > { %2179 = vmatprep.mubr.bf16.mxu0 %v3263_v58  ;;  %2468 = vmatprep.mubr.bf16.mxu1 %v3265_v59  ;;  %v3304_v59 = vld [vmem:[%s4004_s7 + $0x38c] ss:$16 sps:$4 sm:$0xff]  }
 0x1c2   : > { %2180 = vmatmul.mubr.bf16.gmra.mxu0 %v3267_v60  ;;  %2469 = vmatmul.mubr.bf16.gmra.mxu1 %v3268_v61 }
 0x1c3   : > { %2187 = vmatprep.mubr.bf16.mxu0 %v3269_v62  ;;  %2476 = vmatprep.mubr.bf16.mxu1 %v3271_v63  ;;  %v889_v63 = vld [vmem:[%s4008_s22 + $0x30] sm:$0xff] }
 0x1ca   : > { %2188 = vmatmul.mubr.bf16.gmra.mxu0 %v3273_v0  ;;  %2477 = vmatmul.mubr.bf16.gmra.mxu1 %v3274_v1 }
 0x1cb   : > { %2195 = vmatprep.mubr.bf16.mxu0 %v3275_v2  ;;  %2484 = vmatprep.mubr.bf16.mxu1 %v3277_v3 }
 0x1d2   : > { %v2005_v8 = vpop.f32.mrf.mxu0  ;;  %2196 = vmatmul.mubr.bf16.gmra.mxu0 %v3279_v4  ;;  %v2294_v10 = vpop.f32.mrf.mxu1  ;;  %2485 = vmatmul.mubr.bf16.gmra.mxu1 %v3280_v5 }
 0x1d3   : > { %2203 = vmatprep.mubr.bf16.mxu0 %v3281_v6  ;;  %v2295_v11 = vadd.f32 %v2294_v10, %v2005_v8  ;;  %2492 = vmatprep.mubr.bf16.mxu1 %v3283_v7  ;;  %v3299_v6 = vld [vmem:[%s4004_s7 + $0x380] ss:$16 sps:$4 sm:$0xff]   ;;  %v890_v7 = vld [vmem:[%s4008_s22 + $0x38] sm:$0xff]  ;;  %v3307_v10 = vld [vmem:[%s4004_s7 + $0x3a4] ss:$16 sps:$4 sm:$0xff]  }
 0x1d4   : > { %v2007_v12 = vpop.f32.mrf.mxu0  ;;  %v2296_v13 = vpop.f32.mrf.mxu1 }
 0x1d5   : > { %v2549_v14 = vadd.f32 %v2295_v11, %v883_v9  ;;  %v3302_v9 = vld [vmem:[%s4004_s7 + $0x388] ss:$16 sps:$4 sm:$0xff]   ;;  %v3310_v13 = vld [vmem:[%s4004_s7 + $0x3ac] ss:$16 sps:$4 sm:$0xff]  }
 0x1d6   : > { %v2008_v15 = vpop.f32.mrf.mxu0  ;;  %v2297_v18 = vpop.f32.mrf.mxu1 }
 0x1d7   : > { %2613 = vst [vmem:[%s4008_s22] sm:$0xff] %v2549_v14  ;;  %v2298_v21 = vadd.f32 %v2297_v18, %v2008_v15 }
 0x1d8   : > { %v2010_v22 = vpop.f32.mrf.mxu0  ;;  %v2299_v24 = vpop.f32.mrf.mxu1 }
 0x1d9   : > { %v2550_v25 = vadd.f32 %v2298_v21, %v884_v17  ;;  %v891_v17 = vld [vmem:[%s4008_s22 + $0x40] sm:$0xff] }
 0x1da   : > { %v2013_v26 = vpop.f32.mrf.mxu0  ;;  %2204 = vmatmul.mubr.bf16.gmra.mxu0 %v3285_v16  ;;  %v2302_v28 = vpop.f32.mrf.mxu1  ;;  %2493 = vmatmul.mubr.bf16.gmra.mxu1 %v3286_v19  ;;  %v3305_v24 = vld [vmem:[%s4004_s7 + $0x3a0] ss:$16 sps:$4 sm:$0xff]  }
 0x1db   : > { %2211 = vmatprep.mubr.bf16.mxu0 %v3287_v20  ;;  %2614 = vst [vmem:[%s4008_s22 + $0x8] sm:$0xff] %v2550_v25  ;;  %v2303_v29 = vadd.f32 %v2302_v28, %v2013_v26  ;;  %2500 = vmatprep.mubr.bf16.mxu1 %v3289_v23  ;;  %v892_v25 = vld [vmem:[%s4008_s22 + $0x48] sm:$0xff]  ;;  %v3313_v28 = vld [vmem:[%s4004_s7 + $0x3c4] ss:$16 sps:$4 sm:$0xff]  }
 0x1dc   : > { %v2015_v30 = vpop.f32.mrf.mxu0  ;;  %v2304_v31 = vpop.f32.mrf.mxu1 }
 0x1dd   : > { %v2551_v32 = vadd.f32 %v2303_v29, %v885_v27  ;;  %v3308_v27 = vld [vmem:[%s4004_s7 + $0x3a8] ss:$16 sps:$4 sm:$0xff]   ;;  %v3316_v31 = vld [vmem:[%s4004_s7 + $0x3cc] ss:$16 sps:$4 sm:$0xff]  }
 0x1de   : > { %v2016_v33 = vpop.f32.mrf.mxu0  ;;  %v2305_v36 = vpop.f32.mrf.mxu1 }
 0x1df   : > { %2615 = vst [vmem:[%s4008_s22 + $0x10] sm:$0xff] %v2551_v32  ;;  %v2306_v39 = vadd.f32 %v2305_v36, %v2016_v33 }
 0x1e0   : > { %v2018_v40 = vpop.f32.mrf.mxu0  ;;  %v2307_v42 = vpop.f32.mrf.mxu1 }
 0x1e1   : > { %v2552_v43 = vadd.f32 %v2306_v39, %v886_v35  ;;  %v893_v35 = vld [vmem:[%s4008_s22 + $0x50] sm:$0xff] }
 0x1e2   : > { %v2021_v44 = vpop.f32.mrf.mxu0  ;;  %2212 = vmatmul.mubr.bf16.gmra.mxu0 %v3291_v34  ;;  %v2310_v46 = vpop.f32.mrf.mxu1  ;;  %2501 = vmatmul.mubr.bf16.gmra.mxu1 %v3292_v37  ;;  %v3311_v42 = vld [vmem:[%s4004_s7 + $0x3c0] ss:$16 sps:$4 sm:$0xff]  }
 0x1e3   : > { %2219 = vmatprep.mubr.bf16.mxu0 %v3293_v38  ;;  %2616 = vst [vmem:[%s4008_s22 + $0x18] sm:$0xff] %v2552_v43  ;;  %v2311_v47 = vadd.f32 %v2310_v46, %v2021_v44  ;;  %2508 = vmatprep.mubr.bf16.mxu1 %v3295_v41  ;;  %v894_v43 = vld [vmem:[%s4008_s22 + $0x58] sm:$0xff]  ;;  %v3319_v46 = vld [vmem:[%s4004_s7 + $0x3e4] ss:$16 sps:$4 sm:$0xff]  }
 0x1e4   : > { %v2023_v48 = vpop.f32.mrf.mxu0  ;;  %v2312_v49 = vpop.f32.mrf.mxu1 }
 0x1e5   : > { %v2553_v50 = vadd.f32 %v2311_v47, %v887_v45  ;;  %v3314_v45 = vld [vmem:[%s4004_s7 + $0x3c8] ss:$16 sps:$4 sm:$0xff]   ;;  %v3322_v49 = vld [vmem:[%s4004_s7 + $0x3ec] ss:$16 sps:$4 sm:$0xff]  }
 0x1e6   : > { %v2024_v51 = vpop.f32.mrf.mxu0  ;;  %v2313_v54 = vpop.f32.mrf.mxu1 }
 0x1e7   : > { %2617 = vst [vmem:[%s4008_s22 + $0x20] sm:$0xff] %v2553_v50  ;;  %v2314_v57 = vadd.f32 %v2313_v54, %v2024_v51 }
 0x1e8   : > { %v2026_v58 = vpop.f32.mrf.mxu0  ;;  %v2315_v60 = vpop.f32.mrf.mxu1 }
 0x1e9   : > { %v2554_v61 = vadd.f32 %v2314_v57, %v888_v53  ;;  %v895_v53 = vld [vmem:[%s4008_s22 + $0x60] sm:$0xff] }
 0x1ea   : > { %v2029_v62 = vpop.f32.mrf.mxu0  ;;  %2220 = vmatmul.mubr.bf16.gmra.mxu0 %v3297_v52  ;;  %v2318_v0 = vpop.f32.mrf.mxu1  ;;  %2509 = vmatmul.mubr.bf16.gmra.mxu1 %v3298_v55  ;;  %v3317_v60 = vld [vmem:[%s4004_s7 + $0x3e0] ss:$16 sps:$4 sm:$0xff]  }
 0x1eb   : > { %2227 = vmatprep.mubr.bf16.mxu0 %v3301_v56  ;;  %2618 = vst [vmem:[%s4008_s22 + $0x28] sm:$0xff] %v2554_v61  ;;  %v2319_v1 = vadd.f32 %v2318_v0, %v2029_v62  ;;  %2516 = vmatprep.mubr.bf16.mxu1 %v3304_v59  ;;  %v896_v61 = vld [vmem:[%s4008_s22 + $0x68] sm:$0xff] }
 0x1ec   : > { %v2031_v2 = vpop.f32.mrf.mxu0  ;;  %v2320_v3 = vpop.f32.mrf.mxu1 }
 0x1ed   : > { %v2555_v4 = vadd.f32 %v2319_v1, %v889_v63  ;;  %v3320_v63 = vld [vmem:[%s4004_s7 + $0x3e8] ss:$16 sps:$4 sm:$0xff]  }
 0x1ee   : > { %v2032_v5 = vpop.f32.mrf.mxu0  ;;  %v2321_v8 = vpop.f32.mrf.mxu1 }
 0x1ef   : > { %2619 = vst [vmem:[%s4008_s22 + $0x30] sm:$0xff] %v2555_v4  ;;  %v2322_v11 = vadd.f32 %v2321_v8, %v2032_v5  ;;  %v897_v5 = vld [vmem:[%s4008_s22 + $0x70] sm:$0xff] }
 0x1f0   : > { %v2034_v12 = vpop.f32.mrf.mxu0  ;;  %v2323_v14 = vpop.f32.mrf.mxu1 }
 0x1f1   : > { %v2556_v15 = vadd.f32 %v2322_v11, %v890_v7  ;;  %v898_v12 = vld [vmem:[%s4008_s22 + $0x78] sm:$0xff] }
 0x1f2   : > { %v2037_v16 = vpop.f32.mrf.mxu0  ;;  %2228 = vmatmul.mubr.bf16.gmra.mxu0 %v3299_v6  ;;  %v2326_v18 = vpop.f32.mrf.mxu1  ;;  %2517 = vmatmul.mubr.bf16.gmra.mxu1 %v3302_v9 }
 0x1f3   : > { %2235 = vmatprep.mubr.bf16.mxu0 %v3307_v10  ;;  %2620 = vst [vmem:[%s4008_s22 + $0x38] sm:$0xff] %v2556_v15  ;;  %v2327_v19 = vadd.f32 %v2326_v18, %v2037_v16  ;;  %2524 = vmatprep.mubr.bf16.mxu1 %v3310_v13 }
 0x1f4   : > { %v2039_v20 = vpop.f32.mrf.mxu0  ;;  %v2328_v21 = vpop.f32.mrf.mxu1 }
 0x1f5   : > { %v2557_v22 = vadd.f32 %v2327_v19, %v891_v17  ;;  %v899_v19 = vld [vmem:[%s4008_s22 + $0x80] sm:$0xff] }
 0x1f6   : > { %v2040_v23 = vpop.f32.mrf.mxu0  ;;  %v2329_v26 = vpop.f32.mrf.mxu1 }
 0x1f7   : > { %2621 = vst [vmem:[%s4008_s22 + $0x40] sm:$0xff] %v2557_v22  ;;  %v2330_v29 = vadd.f32 %v2329_v26, %v2040_v23  ;;  %v900_v26 = vld [vmem:[%s4008_s22 + $0x88] sm:$0xff] }
 0x1f8   : > { %v2042_v30 = vpop.f32.mrf.mxu0  ;;  %v2331_v32 = vpop.f32.mrf.mxu1 }
 0x1f9   : > { %v2558_v33 = vadd.f32 %v2330_v29, %v892_v25 }
 0x1fa   : > { %v2045_v34 = vpop.f32.mrf.mxu0  ;;  %2236 = vmatmul.mubr.bf16.gmra.mxu0 %v3305_v24  ;;  %v2334_v36 = vpop.f32.mrf.mxu1  ;;  %2525 = vmatmul.mubr.bf16.gmra.mxu1 %v3308_v27 }
 0x1fb   : > { %2243 = vmatprep.mubr.bf16.mxu0 %v3313_v28  ;;  %2622 = vst [vmem:[%s4008_s22 + $0x48] sm:$0xff] %v2558_v33  ;;  %v2335_v37 = vadd.f32 %v2334_v36, %v2045_v34  ;;  %2532 = vmatprep.mubr.bf16.mxu1 %v3316_v31  ;;  %v901_v33 = vld [vmem:[%s4008_s22 + $0x90] sm:$0xff] }
 0x1fc   : > { %v2047_v38 = vpop.f32.mrf.mxu0  ;;  %v2336_v39 = vpop.f32.mrf.mxu1 }
 0x1fd   : > { %v2559_v40 = vadd.f32 %v2335_v37, %v893_v35 }
 0x1fe   : > { %v2048_v41 = vpop.f32.mrf.mxu0  ;;  %v2337_v44 = vpop.f32.mrf.mxu1 }
 0x1ff   : > { %2623 = vst [vmem:[%s4008_s22 + $0x50] sm:$0xff] %v2559_v40  ;;  %v2338_v47 = vadd.f32 %v2337_v44, %v2048_v41  ;;  %v902_v40 = vld [vmem:[%s4008_s22 + $0x98] sm:$0xff] }
 0x200   : > { %v2050_v48 = vpop.f32.mrf.mxu0  ;;  %v2339_v50 = vpop.f32.mrf.mxu1 }
 0x201   : > { %v2560_v51 = vadd.f32 %v2338_v47, %v894_v43  ;;  %v903_v47 = vld [vmem:[%s4008_s22 + $0xa0] sm:$0xff] }
 0x202   : > { %v2053_v52 = vpop.f32.mrf.mxu0  ;;  %2244 = vmatmul.mubr.bf16.gmra.mxu0 %v3311_v42  ;;  %v2342_v54 = vpop.f32.mrf.mxu1  ;;  %2533 = vmatmul.mubr.bf16.gmra.mxu1 %v3314_v45 }
 0x203   : > { %2251 = vmatprep.mubr.bf16.mxu0 %v3319_v46  ;;  %2624 = vst [vmem:[%s4008_s22 + $0x58] sm:$0xff] %v2560_v51  ;;  %v2343_v55 = vadd.f32 %v2342_v54, %v2053_v52  ;;  %2540 = vmatprep.mubr.bf16.mxu1 %v3322_v49  ;;  %v904_v54 = vld [vmem:[%s4008_s22 + $0xa8] sm:$0xff] }
 0x204   : > { %v2055_v56 = vpop.f32.mrf.mxu0  ;;  %v2344_v57 = vpop.f32.mrf.mxu1 }
 0x205   : > { %v2561_v58 = vadd.f32 %v2343_v55, %v895_v53 }
 0x206   : > { %v2056_v59 = vpop.f32.mrf.mxu0  ;;  %v2345_v62 = vpop.f32.mrf.mxu1 }
 0x207   : > { %2625 = vst [vmem:[%s4008_s22 + $0x60] sm:$0xff] %v2561_v58  ;;  %v2346_v0 = vadd.f32 %v2345_v62, %v2056_v59 }
 0x208   : > { %v2058_v1 = vpop.f32.mrf.mxu0  ;;  %v2347_v2 = vpop.f32.mrf.mxu1 }
 0x209   : > { %v2562_v3 = vadd.f32 %v2346_v0, %v896_v61  ;;  %v905_v61 = vld [vmem:[%s4008_s22 + $0xb0] sm:$0xff] }
 0x20a   : > { %v2061_v4 = vpop.f32.mrf.mxu0  ;;  %2252 = vmatmul.mubr.bf16.gmra.mxu0 %v3317_v60  ;;  %v2350_v6 = vpop.f32.mrf.mxu1  ;;  %2541 = vmatmul.mubr.bf16.gmra.mxu1 %v3320_v63 }
 0x20b   : > { %2626 = vst [vmem:[%s4008_s22 + $0x68] sm:$0xff] %v2562_v3  ;;  %v2351_v7 = vadd.f32 %v2350_v6, %v2061_v4  ;;  %v906_v4 = vld [vmem:[%s4008_s22 + $0xb8] sm:$0xff] }
 0x20c   : > { %v2063_v8 = vpop.f32.mrf.mxu0  ;;  %v2352_v9 = vpop.f32.mrf.mxu1 }
 0x20d   : > { %v2563_v10 = vadd.f32 %v2351_v7, %v897_v5 }
 0x20e   : > { %v2064_v11 = vpop.f32.mrf.mxu0  ;;  %v2353_v13 = vpop.f32.mrf.mxu1 }
 0x20f   : > { %2627 = vst [vmem:[%s4008_s22 + $0x70] sm:$0xff] %v2563_v10  ;;  %v2354_v14 = vadd.f32 %v2353_v13, %v2064_v11  ;;  %v907_v11 = vld [vmem:[%s4008_s22 + $0xc0] sm:$0xff] }
 0x210   : > { %v2066_v15 = vpop.f32.mrf.mxu0  ;;  %v2355_v16 = vpop.f32.mrf.mxu1 }
 0x211   : > { %v2564_v17 = vadd.f32 %v2354_v14, %v898_v12 }
 0x212   : > { %v2069_v18 = vpop.f32.mrf.mxu0  ;;  %v2358_v20 = vpop.f32.mrf.mxu1 }
 0x213   : > { %2628 = vst [vmem:[%s4008_s22 + $0x78] sm:$0xff] %v2564_v17  ;;  %v2359_v21 = vadd.f32 %v2358_v20, %v2069_v18  ;;  %v908_v18 = vld [vmem:[%s4008_s22 + $0xc8] sm:$0xff] }
 0x214   : > { %v2071_v22 = vpop.f32.mrf.mxu0  ;;  %v2360_v23 = vpop.f32.mrf.mxu1 }
 0x215   : > { %v2565_v24 = vadd.f32 %v2359_v21, %v899_v19 }
 0x216   : > { %v2072_v25 = vpop.f32.mrf.mxu0  ;;  %v2361_v27 = vpop.f32.mrf.mxu1 }
 0x217   : > { %2629 = vst [vmem:[%s4008_s22 + $0x80] sm:$0xff] %v2565_v24  ;;  %v2362_v28 = vadd.f32 %v2361_v27, %v2072_v25  ;;  %v909_v25 = vld [vmem:[%s4008_s22 + $0xd0] sm:$0xff] }
 0x218   : > { %v2074_v29 = vpop.f32.mrf.mxu0  ;;  %v2363_v30 = vpop.f32.mrf.mxu1 }
 0x219   : > { %v2566_v31 = vadd.f32 %v2362_v28, %v900_v26 }
 0x21a   : > { %v2077_v32 = vpop.f32.mrf.mxu0  ;;  %v2366_v34 = vpop.f32.mrf.mxu1 }
 0x21b   : > { %2630 = vst [vmem:[%s4008_s22 + $0x88] sm:$0xff] %v2566_v31  ;;  %v2367_v35 = vadd.f32 %v2366_v34, %v2077_v32  ;;  %v910_v32 = vld [vmem:[%s4008_s22 + $0xd8] sm:$0xff] }
 0x21c   : > { %v2079_v36 = vpop.f32.mrf.mxu0  ;;  %v2368_v37 = vpop.f32.mrf.mxu1 }
 0x21d   : > { %v2567_v38 = vadd.f32 %v2367_v35, %v901_v33 }
 0x21e   : > { %v2080_v39 = vpop.f32.mrf.mxu0  ;;  %v2369_v41 = vpop.f32.mrf.mxu1 }
 0x21f   : > { %2631 = vst [vmem:[%s4008_s22 + $0x90] sm:$0xff] %v2567_v38  ;;  %v2370_v42 = vadd.f32 %v2369_v41, %v2080_v39  ;;  %v911_v39 = vld [vmem:[%s4008_s22 + $0xe0] sm:$0xff] }
 0x220   : > { %v2082_v43 = vpop.f32.mrf.mxu0  ;;  %v2371_v44 = vpop.f32.mrf.mxu1 }
 0x221   : > { %v2568_v45 = vadd.f32 %v2370_v42, %v902_v40 }
 0x222   : > { %v2085_v46 = vpop.f32.mrf.mxu0  ;;  %v2374_v48 = vpop.f32.mrf.mxu1 }
 0x223   : > { %2632 = vst [vmem:[%s4008_s22 + $0x98] sm:$0xff] %v2568_v45  ;;  %v2375_v49 = vadd.f32 %v2374_v48, %v2085_v46  ;;  %v912_v46 = vld [vmem:[%s4008_s22 + $0xe8] sm:$0xff] }
 0x224   : > { %v2087_v50 = vpop.f32.mrf.mxu0  ;;  %v2376_v51 = vpop.f32.mrf.mxu1 }
 0x225   : > { %v2569_v52 = vadd.f32 %v2375_v49, %v903_v47 }
 0x226   : > { %v2088_v53 = vpop.f32.mrf.mxu0  ;;  %v2377_v55 = vpop.f32.mrf.mxu1 }
 0x227   : > { %2633 = vst [vmem:[%s4008_s22 + $0xa0] sm:$0xff] %v2569_v52  ;;  %v2378_v56 = vadd.f32 %v2377_v55, %v2088_v53  ;;  %v913_v53 = vld [vmem:[%s4008_s22 + $0xf0] sm:$0xff] }
 0x228   : > { %v2090_v57 = vpop.f32.mrf.mxu0  ;;  %v2379_v58 = vpop.f32.mrf.mxu1 }
 0x229   : > { %v2570_v59 = vadd.f32 %v2378_v56, %v904_v54 }
 0x22a   : > { %v2093_v60 = vpop.f32.mrf.mxu0  ;;  %v2382_v62 = vpop.f32.mrf.mxu1 }
 0x22b   : > { %2634 = vst [vmem:[%s4008_s22 + $0xa8] sm:$0xff] %v2570_v59  ;;  %v2383_v63 = vadd.f32 %v2382_v62, %v2093_v60  ;;  %v914_v60 = vld [vmem:[%s4008_s22 + $0xf8] sm:$0xff] }
 0x22c   : > { %v2095_v0 = vpop.f32.mrf.mxu0  ;;  %v2384_v1 = vpop.f32.mrf.mxu1 }
 0x22d   : > { %v2571_v2 = vadd.f32 %v2383_v63, %v905_v61 }
 0x22e   : > { %v2096_v3 = vpop.f32.mrf.mxu0  ;;  %v2385_v5 = vpop.f32.mrf.mxu1 }
 0x22f   : > { %2635 = vst [vmem:[%s4008_s22 + $0xb0] sm:$0xff] %v2571_v2  ;;  %v2386_v6 = vadd.f32 %v2385_v5, %v2096_v3  ;;  %v915_v3 = vld [vmem:[%s4008_s22 + $0x100] sm:$0xff] }
 0x230   : > { %v2098_v7 = vpop.f32.mrf.mxu0  ;;  %v2387_v8 = vpop.f32.mrf.mxu1 }
 0x231   : > { %v2572_v9 = vadd.f32 %v2386_v6, %v906_v4 }
 0x232   : > { %v2101_v10 = vpop.f32.mrf.mxu0  ;;  %v2390_v12 = vpop.f32.mrf.mxu1 }
 0x233   : > { %2636 = vst [vmem:[%s4008_s22 + $0xb8] sm:$0xff] %v2572_v9  ;;  %v2391_v13 = vadd.f32 %v2390_v12, %v2101_v10  ;;  %v916_v10 = vld [vmem:[%s4008_s22 + $0x108] sm:$0xff] }
 0x234   : > { %v2103_v14 = vpop.f32.mrf.mxu0  ;;  %v2392_v15 = vpop.f32.mrf.mxu1 }
 0x235   : > { %v2573_v16 = vadd.f32 %v2391_v13, %v907_v11 }
 0x236   : > { %v2104_v17 = vpop.f32.mrf.mxu0  ;;  %v2393_v19 = vpop.f32.mrf.mxu1 }
 0x237   : > { %2637 = vst [vmem:[%s4008_s22 + $0xc0] sm:$0xff] %v2573_v16  ;;  %v2394_v20 = vadd.f32 %v2393_v19, %v2104_v17  ;;  %v917_v17 = vld [vmem:[%s4008_s22 + $0x110] sm:$0xff] }
 0x238   : > { %v2106_v21 = vpop.f32.mrf.mxu0  ;;  %v2395_v22 = vpop.f32.mrf.mxu1 }
 0x239   : > { %v2574_v23 = vadd.f32 %v2394_v20, %v908_v18 }
 0x23a   : > { %v2109_v24 = vpop.f32.mrf.mxu0  ;;  %v2398_v26 = vpop.f32.mrf.mxu1 }
 0x23b   : > { %2638 = vst [vmem:[%s4008_s22 + $0xc8] sm:$0xff] %v2574_v23  ;;  %v2399_v27 = vadd.f32 %v2398_v26, %v2109_v24  ;;  %v918_v24 = vld [vmem:[%s4008_s22 + $0x118] sm:$0xff] }
 0x23c   : > { %v2111_v28 = vpop.f32.mrf.mxu0  ;;  %v2400_v29 = vpop.f32.mrf.mxu1 }
 0x23d   : > { %v2575_v30 = vadd.f32 %v2399_v27, %v909_v25 }
 0x23e   : > { %v2112_v31 = vpop.f32.mrf.mxu0  ;;  %v2401_v33 = vpop.f32.mrf.mxu1 }
 0x23f   : > { %2639 = vst [vmem:[%s4008_s22 + $0xd0] sm:$0xff] %v2575_v30  ;;  %v2402_v34 = vadd.f32 %v2401_v33, %v2112_v31  ;;  %v919_v31 = vld [vmem:[%s4008_s22 + $0x120] sm:$0xff] }
 0x240   : > { %v2114_v35 = vpop.f32.mrf.mxu0  ;;  %v2403_v36 = vpop.f32.mrf.mxu1 }
 0x241   : > { %v2576_v37 = vadd.f32 %v2402_v34, %v910_v32 }
 0x242   : > { %v2117_v38 = vpop.f32.mrf.mxu0  ;;  %v2406_v40 = vpop.f32.mrf.mxu1 }
 0x243   : > { %2640 = vst [vmem:[%s4008_s22 + $0xd8] sm:$0xff] %v2576_v37  ;;  %v2407_v41 = vadd.f32 %v2406_v40, %v2117_v38  ;;  %v920_v38 = vld [vmem:[%s4008_s22 + $0x128] sm:$0xff] }
 0x244   : > { %v2119_v42 = vpop.f32.mrf.mxu0  ;;  %v2408_v43 = vpop.f32.mrf.mxu1 }
 0x245   : > { %v2577_v44 = vadd.f32 %v2407_v41, %v911_v39 }
 0x246   : > { %v2120_v45 = vpop.f32.mrf.mxu0  ;;  %v2409_v47 = vpop.f32.mrf.mxu1 }
 0x247   : > { %2641 = vst [vmem:[%s4008_s22 + $0xe0] sm:$0xff] %v2577_v44  ;;  %v2410_v48 = vadd.f32 %v2409_v47, %v2120_v45  ;;  %v921_v45 = vld [vmem:[%s4008_s22 + $0x130] sm:$0xff] }
 0x248   : > { %v2122_v49 = vpop.f32.mrf.mxu0  ;;  %v2411_v50 = vpop.f32.mrf.mxu1 }
 0x249   : > { %v2578_v51 = vadd.f32 %v2410_v48, %v912_v46 }
 0x24a   : > { %v2125_v52 = vpop.f32.mrf.mxu0  ;;  %v2414_v54 = vpop.f32.mrf.mxu1 }
 0x24b   : > { %2642 = vst [vmem:[%s4008_s22 + $0xe8] sm:$0xff] %v2578_v51  ;;  %v2415_v55 = vadd.f32 %v2414_v54, %v2125_v52  ;;  %v922_v52 = vld [vmem:[%s4008_s22 + $0x138] sm:$0xff] }
 0x24c   : > { %v2127_v56 = vpop.f32.mrf.mxu0  ;;  %v2416_v57 = vpop.f32.mrf.mxu1 }
 0x24d   : > { %v2579_v58 = vadd.f32 %v2415_v55, %v913_v53 }
 0x24e   : > { %v2128_v59 = vpop.f32.mrf.mxu0  ;;  %v2417_v61 = vpop.f32.mrf.mxu1 }
 0x24f   : > { %2643 = vst [vmem:[%s4008_s22 + $0xf0] sm:$0xff] %v2579_v58  ;;  %v2418_v62 = vadd.f32 %v2417_v61, %v2128_v59  ;;  %v923_v59 = vld [vmem:[%s4008_s22 + $0x140] sm:$0xff] }
 0x250   : > { %v2130_v63 = vpop.f32.mrf.mxu0  ;;  %v2419_v0 = vpop.f32.mrf.mxu1 }
 0x251   : > { %v2580_v1 = vadd.f32 %v2418_v62, %v914_v60 }
 0x252   : > { %v2133_v2 = vpop.f32.mrf.mxu0  ;;  %v2422_v4 = vpop.f32.mrf.mxu1 }
 0x253   : > { %2644 = vst [vmem:[%s4008_s22 + $0xf8] sm:$0xff] %v2580_v1  ;;  %v2423_v5 = vadd.f32 %v2422_v4, %v2133_v2  ;;  %v924_v2 = vld [vmem:[%s4008_s22 + $0x148] sm:$0xff] }
 0x254   : > { %v2135_v6 = vpop.f32.mrf.mxu0  ;;  %v2424_v7 = vpop.f32.mrf.mxu1 }
 0x255   : > { %v2581_v8 = vadd.f32 %v2423_v5, %v915_v3 }
 0x256   : > { %v2136_v9 = vpop.f32.mrf.mxu0  ;;  %v2425_v11 = vpop.f32.mrf.mxu1 }
 0x257   : > { %2645 = vst [vmem:[%s4008_s22 + $0x100] sm:$0xff] %v2581_v8  ;;  %v2426_v12 = vadd.f32 %v2425_v11, %v2136_v9  ;;  %v925_v9 = vld [vmem:[%s4008_s22 + $0x150] sm:$0xff] }
 0x258   : > { %v2138_v13 = vpop.f32.mrf.mxu0  ;;  %v2427_v14 = vpop.f32.mrf.mxu1 }
 0x259   : > { %v2582_v15 = vadd.f32 %v2426_v12, %v916_v10 }
 0x25a   : > { %v2141_v16 = vpop.f32.mrf.mxu0  ;;  %v2430_v18 = vpop.f32.mrf.mxu1 }
 0x25b   : > { %2646 = vst [vmem:[%s4008_s22 + $0x108] sm:$0xff] %v2582_v15  ;;  %v2431_v19 = vadd.f32 %v2430_v18, %v2141_v16  ;;  %v926_v16 = vld [vmem:[%s4008_s22 + $0x158] sm:$0xff] }
 0x25c   : > { %v2143_v20 = vpop.f32.mrf.mxu0  ;;  %v2432_v21 = vpop.f32.mrf.mxu1 }
 0x25d   : > { %v2583_v22 = vadd.f32 %v2431_v19, %v917_v17 }
 0x25e   : > { %v2144_v23 = vpop.f32.mrf.mxu0  ;;  %v2433_v25 = vpop.f32.mrf.mxu1 }
 0x25f   : > { %2647 = vst [vmem:[%s4008_s22 + $0x110] sm:$0xff] %v2583_v22  ;;  %v2434_v26 = vadd.f32 %v2433_v25, %v2144_v23  ;;  %v927_v23 = vld [vmem:[%s4008_s22 + $0x160] sm:$0xff] }
 0x260   : > { %v2146_v27 = vpop.f32.mrf.mxu0  ;;  %v2435_v28 = vpop.f32.mrf.mxu1 }
 0x261   : > { %v2584_v29 = vadd.f32 %v2434_v26, %v918_v24 }
 0x262   : > { %v2149_v30 = vpop.f32.mrf.mxu0  ;;  %v2438_v32 = vpop.f32.mrf.mxu1 }
 0x263   : > { %2648 = vst [vmem:[%s4008_s22 + $0x118] sm:$0xff] %v2584_v29  ;;  %v2439_v33 = vadd.f32 %v2438_v32, %v2149_v30  ;;  %v928_v30 = vld [vmem:[%s4008_s22 + $0x168] sm:$0xff] }
 0x264   : > { %v2151_v34 = vpop.f32.mrf.mxu0  ;;  %v2440_v35 = vpop.f32.mrf.mxu1 }
 0x265   : > { %v2585_v36 = vadd.f32 %v2439_v33, %v919_v31 }
 0x266   : > { %v2152_v37 = vpop.f32.mrf.mxu0  ;;  %v2441_v39 = vpop.f32.mrf.mxu1 }
 0x267   : > { %2649 = vst [vmem:[%s4008_s22 + $0x120] sm:$0xff] %v2585_v36  ;;  %v2442_v40 = vadd.f32 %v2441_v39, %v2152_v37  ;;  %v929_v37 = vld [vmem:[%s4008_s22 + $0x170] sm:$0xff] }
 0x268   : > { %v2154_v41 = vpop.f32.mrf.mxu0  ;;  %v2443_v42 = vpop.f32.mrf.mxu1 }
 0x269   : > { %v2586_v43 = vadd.f32 %v2442_v40, %v920_v38 }
 0x26a   : > { %v2157_v44 = vpop.f32.mrf.mxu0  ;;  %v2446_v46 = vpop.f32.mrf.mxu1 }
 0x26b   : > { %2650 = vst [vmem:[%s4008_s22 + $0x128] sm:$0xff] %v2586_v43  ;;  %v2447_v47 = vadd.f32 %v2446_v46, %v2157_v44  ;;  %v930_v44 = vld [vmem:[%s4008_s22 + $0x178] sm:$0xff] }
 0x26c   : > { %v2159_v48 = vpop.f32.mrf.mxu0  ;;  %v2448_v49 = vpop.f32.mrf.mxu1 }
 0x26d   : > { %v2587_v50 = vadd.f32 %v2447_v47, %v921_v45 }
 0x26e   : > { %v2160_v51 = vpop.f32.mrf.mxu0  ;;  %v2449_v53 = vpop.f32.mrf.mxu1 }
 0x26f   : > { %2651 = vst [vmem:[%s4008_s22 + $0x130] sm:$0xff] %v2587_v50  ;;  %v2450_v54 = vadd.f32 %v2449_v53, %v2160_v51  ;;  %v931_v51 = vld [vmem:[%s4008_s22 + $0x180] sm:$0xff] }
 0x270   : > { %v2162_v55 = vpop.f32.mrf.mxu0  ;;  %v2451_v56 = vpop.f32.mrf.mxu1 }
 0x271   : > { %v2588_v57 = vadd.f32 %v2450_v54, %v922_v52 }
 0x272   : > { %v2165_v58 = vpop.f32.mrf.mxu0  ;;  %v2454_v60 = vpop.f32.mrf.mxu1 }
 0x273   : > { %2652 = vst [vmem:[%s4008_s22 + $0x138] sm:$0xff] %v2588_v57  ;;  %v2455_v61 = vadd.f32 %v2454_v60, %v2165_v58  ;;  %v932_v58 = vld [vmem:[%s4008_s22 + $0x188] sm:$0xff] }
 0x274   : > { %v2167_v62 = vpop.f32.mrf.mxu0  ;;  %v2456_v63 = vpop.f32.mrf.mxu1 }
 0x275   : > { %v2589_v0 = vadd.f32 %v2455_v61, %v923_v59 }
 0x276   : > { %v2168_v1 = vpop.f32.mrf.mxu0  ;;  %v2457_v3 = vpop.f32.mrf.mxu1 }
 0x277   : > { %2653 = vst [vmem:[%s4008_s22 + $0x140] sm:$0xff] %v2589_v0  ;;  %v2458_v4 = vadd.f32 %v2457_v3, %v2168_v1  ;;  %v933_v1 = vld [vmem:[%s4008_s22 + $0x190] sm:$0xff] }
 0x278   : > { %v2170_v5 = vpop.f32.mrf.mxu0  ;;  %v2459_v6 = vpop.f32.mrf.mxu1 }
 0x279   : > { %v2590_v7 = vadd.f32 %v2458_v4, %v924_v2 }
 0x27a   : > { %v2173_v8 = vpop.f32.mrf.mxu0  ;;  %v2462_v10 = vpop.f32.mrf.mxu1 }
 0x27b   : > { %2654 = vst [vmem:[%s4008_s22 + $0x148] sm:$0xff] %v2590_v7  ;;  %v2463_v11 = vadd.f32 %v2462_v10, %v2173_v8  ;;  %v934_v8 = vld [vmem:[%s4008_s22 + $0x198] sm:$0xff] }
 0x27c   : > { %v2175_v12 = vpop.f32.mrf.mxu0  ;;  %v2464_v13 = vpop.f32.mrf.mxu1 }
 0x27d   : > { %v2591_v14 = vadd.f32 %v2463_v11, %v925_v9 }
 0x27e   : > { %v2176_v15 = vpop.f32.mrf.mxu0  ;;  %v2465_v17 = vpop.f32.mrf.mxu1 }
 0x27f   : > { %2655 = vst [vmem:[%s4008_s22 + $0x150] sm:$0xff] %v2591_v14  ;;  %v2466_v18 = vadd.f32 %v2465_v17, %v2176_v15  ;;  %v935_v15 = vld [vmem:[%s4008_s22 + $0x1a0] sm:$0xff] }
 0x280   : > { %v2178_v19 = vpop.f32.mrf.mxu0  ;;  %v2467_v20 = vpop.f32.mrf.mxu1 }
 0x281   : > { %v2592_v21 = vadd.f32 %v2466_v18, %v926_v16 }
 0x282   : > { %v2181_v22 = vpop.f32.mrf.mxu0  ;;  %v2470_v24 = vpop.f32.mrf.mxu1 }
 0x283   : > { %2656 = vst [vmem:[%s4008_s22 + $0x158] sm:$0xff] %v2592_v21  ;;  %v2471_v25 = vadd.f32 %v2470_v24, %v2181_v22  ;;  %v936_v22 = vld [vmem:[%s4008_s22 + $0x1a8] sm:$0xff] }
 0x284   : > { %v2183_v26 = vpop.f32.mrf.mxu0  ;;  %v2472_v27 = vpop.f32.mrf.mxu1 }
 0x285   : > { %v2593_v28 = vadd.f32 %v2471_v25, %v927_v23 }
 0x286   : > { %v2184_v29 = vpop.f32.mrf.mxu0  ;;  %v2473_v31 = vpop.f32.mrf.mxu1 }
 0x287   : > { %2657 = vst [vmem:[%s4008_s22 + $0x160] sm:$0xff] %v2593_v28  ;;  %v2474_v32 = vadd.f32 %v2473_v31, %v2184_v29  ;;  %v937_v29 = vld [vmem:[%s4008_s22 + $0x1b0] sm:$0xff] }
 0x288   : > { %v2186_v33 = vpop.f32.mrf.mxu0  ;;  %v2475_v34 = vpop.f32.mrf.mxu1 }
 0x289   : > { %v2594_v35 = vadd.f32 %v2474_v32, %v928_v30 }
 0x28a   : > { %v2189_v36 = vpop.f32.mrf.mxu0  ;;  %v2478_v38 = vpop.f32.mrf.mxu1 }
 0x28b   : > { %2658 = vst [vmem:[%s4008_s22 + $0x168] sm:$0xff] %v2594_v35  ;;  %v2479_v39 = vadd.f32 %v2478_v38, %v2189_v36  ;;  %v938_v36 = vld [vmem:[%s4008_s22 + $0x1b8] sm:$0xff] }
 0x28c   : > { %v2191_v40 = vpop.f32.mrf.mxu0  ;;  %v2480_v41 = vpop.f32.mrf.mxu1 }
 0x28d   : > { %v2595_v42 = vadd.f32 %v2479_v39, %v929_v37 }
 0x28e   : > { %v2192_v43 = vpop.f32.mrf.mxu0  ;;  %v2481_v45 = vpop.f32.mrf.mxu1 }
 0x28f   : > { %2659 = vst [vmem:[%s4008_s22 + $0x170] sm:$0xff] %v2595_v42  ;;  %v2482_v46 = vadd.f32 %v2481_v45, %v2192_v43  ;;  %v939_v43 = vld [vmem:[%s4008_s22 + $0x1c0] sm:$0xff] }
 0x290   : > { %v2194_v47 = vpop.f32.mrf.mxu0  ;;  %v2483_v48 = vpop.f32.mrf.mxu1 }
 0x291   : > { %v2596_v49 = vadd.f32 %v2482_v46, %v930_v44 }
 0x292   : > { %v2197_v50 = vpop.f32.mrf.mxu0  ;;  %v2486_v52 = vpop.f32.mrf.mxu1 }
 0x293   : > { %2660 = vst [vmem:[%s4008_s22 + $0x178] sm:$0xff] %v2596_v49  ;;  %v2487_v53 = vadd.f32 %v2486_v52, %v2197_v50  ;;  %v940_v50 = vld [vmem:[%s4008_s22 + $0x1c8] sm:$0xff] }
 0x294   : > { %v2199_v54 = vpop.f32.mrf.mxu0  ;;  %v2488_v55 = vpop.f32.mrf.mxu1 }
 0x295   : > { %v2597_v56 = vadd.f32 %v2487_v53, %v931_v51 }
 0x296   : > { %v2200_v57 = vpop.f32.mrf.mxu0  ;;  %v2489_v59 = vpop.f32.mrf.mxu1 }
 0x297   : > { %2661 = vst [vmem:[%s4008_s22 + $0x180] sm:$0xff] %v2597_v56  ;;  %v2490_v60 = vadd.f32 %v2489_v59, %v2200_v57  ;;  %v941_v57 = vld [vmem:[%s4008_s22 + $0x1d0] sm:$0xff] }
 0x298   : > { %v2202_v61 = vpop.f32.mrf.mxu0  ;;  %v2491_v62 = vpop.f32.mrf.mxu1 }
 0x299   : > { %v2598_v63 = vadd.f32 %v2490_v60, %v932_v58 }
 0x29a   : > { %v2205_v0 = vpop.f32.mrf.mxu0  ;;  %v2494_v2 = vpop.f32.mrf.mxu1 }
 0x29b   : > { %2662 = vst [vmem:[%s4008_s22 + $0x188] sm:$0xff] %v2598_v63  ;;  %v2495_v3 = vadd.f32 %v2494_v2, %v2205_v0  ;;  %v942_v0 = vld [vmem:[%s4008_s22 + $0x1d8] sm:$0xff] }
 0x29c   : > { %v2207_v4 = vpop.f32.mrf.mxu0  ;;  %v2496_v5 = vpop.f32.mrf.mxu1 }
 0x29d   : > { %v2599_v6 = vadd.f32 %v2495_v3, %v933_v1 }
 0x29e   : > { %v2208_v7 = vpop.f32.mrf.mxu0  ;;  %v2497_v9 = vpop.f32.mrf.mxu1 }
 0x29f   : > { %2663 = vst [vmem:[%s4008_s22 + $0x190] sm:$0xff] %v2599_v6  ;;  %v2498_v10 = vadd.f32 %v2497_v9, %v2208_v7  ;;  %v943_v7 = vld [vmem:[%s4008_s22 + $0x1e0] sm:$0xff] }
 0x2a0   : > { %v2210_v11 = vpop.f32.mrf.mxu0  ;;  %v2499_v12 = vpop.f32.mrf.mxu1 }
 0x2a1   : > { %v2600_v13 = vadd.f32 %v2498_v10, %v934_v8 }
 0x2a2   : > { %v2213_v14 = vpop.f32.mrf.mxu0  ;;  %v2502_v16 = vpop.f32.mrf.mxu1 }
 0x2a3   : > { %2664 = vst [vmem:[%s4008_s22 + $0x198] sm:$0xff] %v2600_v13  ;;  %v2503_v17 = vadd.f32 %v2502_v16, %v2213_v14  ;;  %v944_v14 = vld [vmem:[%s4008_s22 + $0x1e8] sm:$0xff] }
 0x2a4   : > { %v2215_v18 = vpop.f32.mrf.mxu0  ;;  %v2504_v19 = vpop.f32.mrf.mxu1 }
 0x2a5   : > { %v2601_v20 = vadd.f32 %v2503_v17, %v935_v15 }
 0x2a6   : > { %v2216_v21 = vpop.f32.mrf.mxu0  ;;  %v2505_v23 = vpop.f32.mrf.mxu1 }
 0x2a7   : > { %2665 = vst [vmem:[%s4008_s22 + $0x1a0] sm:$0xff] %v2601_v20  ;;  %v2506_v24 = vadd.f32 %v2505_v23, %v2216_v21  ;;  %v945_v21 = vld [vmem:[%s4008_s22 + $0x1f0] sm:$0xff] }
 0x2a8   : > { %v2218_v25 = vpop.f32.mrf.mxu0  ;;  %v2507_v26 = vpop.f32.mrf.mxu1 }
 0x2a9   : > { %v2602_v27 = vadd.f32 %v2506_v24, %v936_v22 }
 0x2aa   : > { %v2221_v28 = vpop.f32.mrf.mxu0  ;;  %v2510_v30 = vpop.f32.mrf.mxu1 }
 0x2ab   : > { %2666 = vst [vmem:[%s4008_s22 + $0x1a8] sm:$0xff] %v2602_v27  ;;  %v2511_v31 = vadd.f32 %v2510_v30, %v2221_v28  ;;  %v946_v28 = vld [vmem:[%s4008_s22 + $0x1f8] sm:$0xff] }
 0x2ac   : > { %v2223_v32 = vpop.f32.mrf.mxu0  ;;  %v2512_v33 = vpop.f32.mrf.mxu1 }
 0x2ad   : > { %v2603_v34 = vadd.f32 %v2511_v31, %v937_v29 }
 0x2ae   : > { %v2224_v35 = vpop.f32.mrf.mxu0  ;;  %v2513_v37 = vpop.f32.mrf.mxu1 }
 0x2af   : > { %2667 = vst [vmem:[%s4008_s22 + $0x1b0] sm:$0xff] %v2603_v34  ;;  %v2514_v38 = vadd.f32 %v2513_v37, %v2224_v35 }
 0x2b0   : > { %v2226_v39 = vpop.f32.mrf.mxu0  ;;  %v2515_v40 = vpop.f32.mrf.mxu1 }
 0x2b1   : > { %v2604_v41 = vadd.f32 %v2514_v38, %v938_v36 }
 0x2b2   : > { %v2229_v42 = vpop.f32.mrf.mxu0  ;;  %v2518_v44 = vpop.f32.mrf.mxu1 }
 0x2b3   : > { %2668 = vst [vmem:[%s4008_s22 + $0x1b8] sm:$0xff] %v2604_v41  ;;  %v2519_v45 = vadd.f32 %v2518_v44, %v2229_v42 }
 0x2b4   : > { %v2231_v46 = vpop.f32.mrf.mxu0  ;;  %v2520_v47 = vpop.f32.mrf.mxu1 }
 0x2b5   : > { %v2605_v48 = vadd.f32 %v2519_v45, %v939_v43 }
 0x2b6   : > { %v2232_v49 = vpop.f32.mrf.mxu0  ;;  %v2521_v51 = vpop.f32.mrf.mxu1 }
 0x2b7   : > { %2669 = vst [vmem:[%s4008_s22 + $0x1c0] sm:$0xff] %v2605_v48  ;;  %v2522_v52 = vadd.f32 %v2521_v51, %v2232_v49 }
 0x2b8   : > { %v2234_v53 = vpop.f32.mrf.mxu0  ;;  %v2523_v54 = vpop.f32.mrf.mxu1 }
 0x2b9   : > { %v2606_v55 = vadd.f32 %v2522_v52, %v940_v50 }
 0x2ba   : > { %v2237_v56 = vpop.f32.mrf.mxu0  ;;  %v2526_v58 = vpop.f32.mrf.mxu1 }
 0x2bb   : > { %2670 = vst [vmem:[%s4008_s22 + $0x1c8] sm:$0xff] %v2606_v55  ;;  %v2527_v59 = vadd.f32 %v2526_v58, %v2237_v56 }
 0x2bc   : > { %v2239_v60 = vpop.f32.mrf.mxu0  ;;  %v2528_v61 = vpop.f32.mrf.mxu1 }
 0x2bd   : > { %v2607_v62 = vadd.f32 %v2527_v59, %v941_v57 }
 0x2be   : > { %v2240_v63 = vpop.f32.mrf.mxu0  ;;  %v2529_v1 = vpop.f32.mrf.mxu1 }
 0x2bf   : > { %2671 = vst [vmem:[%s4008_s22 + $0x1d0] sm:$0xff] %v2607_v62  ;;  %v2530_v2 = vadd.f32 %v2529_v1, %v2240_v63 }
 0x2c0   : > { %v2242_v3 = vpop.f32.mrf.mxu0  ;;  %v2531_v4 = vpop.f32.mrf.mxu1 }
 0x2c1   : > { %v2608_v5 = vadd.f32 %v2530_v2, %v942_v0 }
 0x2c2   : > { %v2245_v6 = vpop.f32.mrf.mxu0  ;;  %v2534_v8 = vpop.f32.mrf.mxu1 }
 0x2c3   : > { %2672 = vst [vmem:[%s4008_s22 + $0x1d8] sm:$0xff] %v2608_v5  ;;  %v2535_v9 = vadd.f32 %v2534_v8, %v2245_v6 }
 0x2c4   : > { %v2247_v10 = vpop.f32.mrf.mxu0  ;;  %v2536_v11 = vpop.f32.mrf.mxu1 }
 0x2c5   : > { %v2609_v12 = vadd.f32 %v2535_v9, %v943_v7 }
 0x2c6   : > { %v2248_v13 = vpop.f32.mrf.mxu0  ;;  %v2537_v15 = vpop.f32.mrf.mxu1 }
 0x2c7   : > { %2673 = vst [vmem:[%s4008_s22 + $0x1e0] sm:$0xff] %v2609_v12  ;;  %v2538_v16 = vadd.f32 %v2537_v15, %v2248_v13 }
 0x2c8   : > { %v2250_v17 = vpop.f32.mrf.mxu0  ;;  %v2539_v18 = vpop.f32.mrf.mxu1 }
 0x2c9   : > { %v2610_v19 = vadd.f32 %v2538_v16, %v944_v14 }
 0x2ca   : > { %v2253_v20 = vpop.f32.mrf.mxu0  ;;  %v2542_v22 = vpop.f32.mrf.mxu1 }
 0x2cb   : > { %2674 = vst [vmem:[%s4008_s22 + $0x1e8] sm:$0xff] %v2610_v19  ;;  %v2543_v23 = vadd.f32 %v2542_v22, %v2253_v20 }
 0x2cc   : > { %v2255_v24 = vpop.f32.mrf.mxu0  ;;  %v2544_v25 = vpop.f32.mrf.mxu1 }
 0x2cd   : > { %v2611_v26 = vadd.f32 %v2543_v23, %v945_v21 }
 0x2ce   : > { %v2256_v27 = vpop.f32.mrf.mxu0  ;;  %v2545_v29 = vpop.f32.mrf.mxu1 }
 0x2cf   : > { %2675 = vst [vmem:[%s4008_s22 + $0x1f0] sm:$0xff] %v2611_v26  ;;  %v2546_v30 = vadd.f32 %v2545_v29, %v2256_v27 }
 0x2d0   : > { %v2258_v31 = vpop.f32.mrf.mxu0  ;;  %v2547_v32 = vpop.f32.mrf.mxu1 }
 0x2d1   : > { %v2612_v33 = vadd.f32 %v2546_v30, %v946_v28 }
 0x2d3   : > { %2676 = vst [vmem:[%s4008_s22 + $0x1f8] sm:$0xff] %v2612_v33 }
 0x2d4   : > { %3336 = shalt.err (!%p3333_p2)
}
 0x2d5   : > { %s3337_s22 = scalar_lea.hbm %s4465_s0, 8192  ;;  %s3341_s4 = scalar_lea.hbm %s4538_s3, 16384 }
 0x2d6   : > { %p3338_p3 = scmp.ne.s32.totalorder %s4465_s0, %s3337_s22  ;;  %p3342_p6 = scmp.lt.s32.totalorder %s4465_s0, %s4538_s3 }
 0x2d7   : > { %p3343_p7 = scmp.lt.s32.totalorder %s3341_s4, %s3337_s22 }
 0x2d8   : > { %p3339_p4 = pnand %p3338_p3, %p3576_p0 }
 0x2d9   : > { %p3344_p8 = por %p3343_p7, %p3342_p6 }
 0x2da   : > { %p3340_p5 = pneg %p3339_p4 }
 0x2dc   : > { %p3345_p9 = pnand %p3344_p8, %p3340_p5 }
 0x2de   : > { %3348 = shalt.err (!%p3345_p9)
}
 0x2df   : > { %s3451_s7 = smov 128   ;;  %s3452_s1 = smov 256  }
 0x2e0   : > { %s3453_s17 = smov 8  }
 0x2e1   : > { %2992 = dma.vmem_to_hbm [thread:$0]  (%p3576_p0), %s4467_s15, 8192, %s4465_s0, %s4472_s20, %s3451_s7, %s3452_s1, %s3453_s17  }
 0x2e2 PF: > { %p2998_p10 = scmp.ge.s32.totalorder %s3447_s23, 2  ;;  %s2708_s19 = sand.u32 1, %s3403_s12  }
 0x2e3   : > { %s2709_s8 = scalar_lea.sflag [#allocation5], %s2708_s19 }
 0x2e4   : > { %p2995_p11 = pnand %p2998_p10, %p3580_p1 }
 0x2e6   : > { %p2996_p12 = pneg %p2995_p11 }
 0x2e8   : > { %3398 = dma.done.wait (%p2996_p12), %s2709_s8, 8192  }
 0x2e9   : > { %3400 = vsyncadd (%p2996_p12), %s2709_s8, 4294959104  ;;  %s16_s23 = sadd.s32 1, %s3447_s23   ;;  %s4553_s20 = sld [smem:[#allocation7_spill]] }
 0x2ea   : > { %p13_p13 = scmp.ge.s32.totalorder %s16_s23, 6   ;;  %s4554_s28 = sld [smem:[#allocation8_spill]] }
 0x2eb   : > { %s4555_s22 = sld [smem:[#allocation9_spill]]  ;;  %s4556_s12 = smov %s3407_s13 }
 0x2ec   : > { %s4557_s13 = smov %s3411_s14  ;;  %s4558_s14 = smov %s3567_s10 }
 0x2ed   : > { %s4559_s15 = smov %s3419_s16  ;;  %s4560_s16 = smov %s3570_s11 }
 0x2ee   : > { %s4561_s17 = smov %s3427_s18  ;;  %s4562_s18 = smov %s3557_s5 }
 0x2ef   : > { %s4563_s19 = smov %s3439_s21  ;;  %15 = sbr.rel (!%p13_p13) target bundleno = 10 (0xa), region = 151 }
 0x2f0   : > { %s4564_s21 = smov %s4554_s28 }
 0x2f4   :  { %2714 = vsyncpa [#allocation5], 1 }
 0x2f5   :  { %2716 = vsyncpa [#allocation5 + $0x1], 1 }

</bundles_post_ra>
